<compile_context>
chip_gen: v5e
topology: v5e:2x2
jax: 0.10.0
libtpu: 0.0.40
codegen_flags: <defaults>
</compile_context>

<pallas_src>
from functools import partial

import numpy as np
import jax
import jax.numpy as jnp
from jax import lax
from jax.experimental import pallas as pl
from jax.experimental.pallas import tpu as pltpu


# --------------------------------------------------------------------------
# Fused kernel
# --------------------------------------------------------------------------
def fused_expansive_kernel(*refs, NB, H, W, c_in, c_mid, c_out, upsample):
    """Fused expansive_block forward for NB batch images packed along rows.

    Inputs (lane-packed, channels fastest within lanes):
      x_ref    : (NB, H, W*Cin)          bf16
      a1_ref   : (3, W*Cin,  W*Cmid)     bf16  banded conv1 weights (BN folded)
      b1_ref   : (1, W*Cmid)             f32   folded BN bias, tiled over W
      a2_ref   : (3, W*Cmid, W*Cout)     bf16  banded conv2 weights (BN folded)
      d3_ref   : (W*Cin,  W*Cout)        bf16  block-diag 1x1 conv weights
      b23_ref  : (1, W*Cout)             f32   folded biases of conv2 + block2
      [arow_ref: (2H, H)                 bf16  row-interp matrix (upsample)]
      [bcol_ref: (W*Cout, 2W*Cout)       bf16  col-interp matrix (upsample)]
    Output:
      o_ref    : (NB, H, W*Cout) or (NB, 2H, 2W*Cout) when upsample=True
    Scratch (f32, casts to bf16 happen at the matmul inputs):
      xpad_ref : (NB*(H+2), W*Cin)   row-packed, per-image vertical halos
      hpad_ref : (NB*(H+2), W*Cmid)
    """
    if upsample:
        (x_ref, a1_ref, b1_ref, a2_ref, d3_ref, b23_ref,
         arow_ref, bcol_ref, o_ref, xpad_ref, hpad_ref) = refs
    else:
        (x_ref, a1_ref, b1_ref, a2_ref, d3_ref, b23_ref,
         o_ref, xpad_ref, hpad_ref) = refs

    Hp = H + 2                    # rows per image incl. top/bottom halo
    M1 = NB * Hp - 2              # rows produced by the banded matmuls
    f32 = jnp.float32
    bf16 = jnp.bfloat16

    x_val = x_ref[...]            # (NB, H, W*Cin) bf16

    # ---- vertically padded input: zero ONLY the 2 halo rows per image
    for j in range(NB):           # NB is a small compile-time constant
        base = j * Hp
        xpad_ref[pl.ds(base, 1), :] = jnp.zeros((1, W * c_in), f32)
        xpad_ref[pl.ds(base + H + 1, 1), :] = jnp.zeros((1, W * c_in), f32)
        xpad_ref[pl.ds(base + 1, H), :] = x_val[j].astype(f32)

    # ---- conv3x3 (in->mid) + BN + ReLU : 3 row-shifted banded matmuls
    acc1 = jnp.dot(xpad_ref[pl.ds(0, M1), :].astype(bf16), a1_ref[0],
                   preferred_element_type=f32)
    acc1 += jnp.dot(xpad_ref[pl.ds(1, M1), :].astype(bf16), a1_ref[1],
                    preferred_element_type=f32)
    acc1 += jnp.dot(xpad_ref[pl.ds(2, M1), :].astype(bf16), a1_ref[2],
                    preferred_element_type=f32)
    h = jnp.maximum(acc1 + b1_ref[...], 0.0)          # (M1, W*Cmid) f32
    # Rows j*Hp + i (0 <= i < H) of `h` are valid; the 2 rows between images
    # are cross-image garbage and are never copied into hpad below.

    # ---- padded buffer for the second conv (valid rows only, halos zeroed)
    for j in range(NB):
        base = j * Hp
        hpad_ref[pl.ds(base, 1), :] = jnp.zeros((1, W * c_mid), f32)
        hpad_ref[pl.ds(base + H + 1, 1), :] = jnp.zeros((1, W * c_mid), f32)
        hpad_ref[pl.ds(base + 1, H), :] = h[base:base + H, :]

    # ---- conv3x3 (mid->out) + BN
    acc2 = jnp.dot(hpad_ref[pl.ds(0, M1), :].astype(bf16), a2_ref[0],
                   preferred_element_type=f32)
    acc2 += jnp.dot(hpad_ref[pl.ds(1, M1), :].astype(bf16), a2_ref[1],
                    preferred_element_type=f32)
    acc2 += jnp.dot(hpad_ref[pl.ds(2, M1), :].astype(bf16), a2_ref[2],
                    preferred_element_type=f32)

    # ---- block2: conv1x1 + BN as one block-diagonal matmul over NB*H rows
    x_flat = x_val.reshape(NB * H, W * c_in)
    out2 = jnp.dot(x_flat, d3_ref[...], preferred_element_type=f32)

    b23 = b23_ref[...]
    if upsample:
        arow = arow_ref[...]      # (2H, H)            bf16
        bcol = bcol_ref[...]      # (W*Cout, 2W*Cout)  bf16

    # ---- residual add + ReLU (+ optional 2x bilinear upsample), per image
    for j in range(NB):
        base = j * Hp
        res_j = jnp.maximum(acc2[base:base + H, :]
                            + out2[j * H:(j + 1) * H, :] + b23, 0.0)
        if not upsample:
            o_ref[j] = res_j.astype(o_ref.dtype)       # lane-dense store
        else:
            t = jnp.dot(arow, res_j.astype(bf16), preferred_element_type=f32)
            up = jnp.dot(t.astype(bf16), bcol, preferred_element_type=f32)
            o_ref[j] = up.astype(o_ref.dtype)          # (2H, 2W*Cout)


# --------------------------------------------------------------------------
# pallas_call wrapper
# --------------------------------------------------------------------------
def _weight_spec(block_shape, index_map, buffered):
    """Constant-index weight spec; single-buffered when supported."""
    if buffered and hasattr(pl, "Buffered"):
        try:
            return pl.BlockSpec(block_shape, index_map,
                                pipeline_mode=pl.Buffered(1))
        except TypeError:
            pass
    return pl.BlockSpec(block_shape, index_map)


def _estimate_vmem_bytes(NB, H, W, c_in, c_mid, c_out, upsample):
    bf, f4 = 2, 4
    w_bytes = (3 * W * c_in * W * c_mid + 3 * W * c_mid * W * c_out
               + W * c_in * W * c_out) * bf + (W * c_mid + W * c_out) * f4
    if upsample:
        w_bytes += (2 * H * H + W * c_out * 2 * W * c_out) * bf
        o_bytes = NB * 2 * H * 2 * W * c_out * f4
    else:
        o_bytes = NB * H * W * c_out * f4
    x_bytes = NB * H * W * c_in * bf
    scratch = NB * (H + 2) * W * (c_in + c_mid) * f4
    return 2 * (w_bytes + o_bytes + x_bytes) + scratch


def _fused_call(x_packed, pk, *, H, W, c_in, c_mid, c_out, upsample,
                out_dtype=jnp.float32):
    N = x_packed.shape[0]
    # Pack as many images as possible into each grid step (large matmul M);
    # only split into 2 "parallel" groups (for v7x's 2 TensorCores) when each
    # group still holds >= 2 images.  At N=2 a single M=2H step wins.
    groups = 2 if (N % 2 == 0 and N >= 4) else 1
    NB = N // groups

    if upsample:
        out_shape = jax.ShapeDtypeStruct((N, 2 * H, 2 * W * c_out), out_dtype)
        out_spec = pl.BlockSpec((NB, 2 * H, 2 * W * c_out), lambda g: (g, 0, 0))
    else:
        out_shape = jax.ShapeDtypeStruct((N, H, W * c_out), out_dtype)
        out_spec = pl.BlockSpec((NB, H, W * c_out), lambda g: (g, 0, 0))

    vmem_limit = int(min(max(4 * _estimate_vmem_bytes(
        NB, H, W, c_in, c_mid, c_out, upsample), 32 * 1024 * 1024),
        48 * 1024 * 1024))

    kern = partial(fused_expansive_kernel, NB=NB, H=H, W=W, c_in=c_in,
                   c_mid=c_mid, c_out=c_out, upsample=upsample)

    args = [x_packed, pk['A1'], pk['b1'], pk['A2'], pk['D3'], pk['b23']]
    if upsample:
        args += [pk['Arow'], pk['Bcol']]

    def build(buffered):
        in_specs = [
            pl.BlockSpec((NB, H, W * c_in), lambda g: (g, 0, 0)),
            _weight_spec((3, W * c_in, W * c_mid), lambda g: (0, 0, 0), buffered),
            _weight_spec((1, W * c_mid), lambda g: (0, 0), buffered),
            _weight_spec((3, W * c_mid, W * c_out), lambda g: (0, 0, 0), buffered),
            _weight_spec((W * c_in, W * c_out), lambda g: (0, 0), buffered),
            _weight_spec((1, W * c_out), lambda g: (0, 0), buffered),
        ]
        if upsample:
            in_specs += [
                _weight_spec((2 * H, H), lambda g: (0, 0), buffered),
                _weight_spec((W * c_out, 2 * W * c_out), lambda g: (0, 0),
                             buffered),
            ]
        return pl.pallas_call(
            kern,
            out_shape=out_shape,
            grid=(groups,),
            in_specs=in_specs,
            out_specs=out_spec,
            scratch_shapes=[
                pltpu.VMEM((NB * (H + 2), W * c_in), jnp.float32),
                pltpu.VMEM((NB * (H + 2), W * c_mid), jnp.float32),
            ],
            compiler_params=pltpu.CompilerParams(
                dimension_semantics=("parallel",),
                vmem_limit_bytes=vmem_limit),
        )

    try:
        out = build(True)(*args)
        jax.block_until_ready(out)
        return out
    except Exception:
        # Fall back to default (double-buffered) weight specs if the
        # single-buffer pipeline_mode is unsupported on this JAX version.
        return build(False)(*args)


# --------------------------------------------------------------------------
# Parameter init + packing (host-side, deterministic)
# --------------------------------------------------------------------------
_BN_EPS = 1e-5


def _fold_bn(conv_bias, gamma, beta, mean, var):
    scale = gamma / jnp.sqrt(var + _BN_EPS)
    bias = (conv_bias - mean) * scale + beta
    return scale.astype(jnp.float32), bias.astype(jnp.float32)


def init_params(key, c_in, c_mid, c_out):
    ks = jax.random.split(key, 16)

    def bn_params(k, c):
        k1, k2, k3, k4 = jax.random.split(k, 4)
        gamma = 1.0 + 0.1 * jax.random.normal(k1, (c,), jnp.float32)
        beta = 0.1 * jax.random.normal(k2, (c,), jnp.float32)
        mean = 0.1 * jax.random.normal(k3, (c,), jnp.float32)
        var = jnp.abs(jax.random.normal(k4, (c,), jnp.float32)) + 0.5
        return gamma, beta, mean, var

    # block1: conv3x3 (in->mid) + BN + ReLU + conv3x3 (mid->out) + BN
    w1 = 0.1 * jax.random.normal(ks[0], (3, 3, c_in, c_mid), jnp.float32)  # HWIO
    cb1 = 0.1 * jax.random.normal(ks[1], (c_mid,), jnp.float32)
    s1, b1 = _fold_bn(cb1, *bn_params(ks[2], c_mid))

    w2 = 0.1 * jax.random.normal(ks[3], (3, 3, c_mid, c_out), jnp.float32)
    cb2 = 0.1 * jax.random.normal(ks[4], (c_out,), jnp.float32)
    s2, b2 = _fold_bn(cb2, *bn_params(ks[5], c_out))

    # block2: conv1x1 (in->out) + BN
    w3 = 0.1 * jax.random.normal(ks[6], (c_in, c_out), jnp.float32)
    cb3 = 0.1 * jax.random.normal(ks[7], (c_out,), jnp.float32)
    s3, b3 = _fold_bn(cb3, *bn_params(ks[8], c_out))

    return dict(w1=w1, s1=s1, b1=b1, w2=w2, s2=s2, b2=b2, w3=w3, s3=s3, b3=b3)


def _interp_matrix(out_size, in_size):
    """align_corners=True bilinear interpolation matrix (out_size, in_size)."""
    if in_size == 1:
        return np.ones((out_size, 1), np.float32)
    src = np.arange(out_size, dtype=np.float64) * (in_size - 1) / (out_size - 1)
    lo = np.floor(src).astype(np.int64)
    hi = np.minimum(lo + 1, in_size - 1)
    frac = src - lo
    M = np.zeros((out_size, in_size), np.float64)
    M[np.arange(out_size), lo] += 1.0 - frac
    M[np.arange(out_size), hi] += frac
    return M.astype(np.float32)


def _band_matrices(w_hwio, width):
    """3x3 conv (padding=1 along W) as 3 banded matrices (W*Cin, W*Cout)."""
    _, _, cin, cout = w_hwio.shape
    A = np.zeros((3, width * cin, width * cout), np.float32)
    for dy in range(3):
        for xo in range(width):
            for dx in range(3):
                xi = xo + dx - 1
                if 0 <= xi < width:
                    A[dy, xi * cin:(xi + 1) * cin,
                      xo * cout:(xo + 1) * cout] = w_hwio[dy, dx]
    return A


def _blockdiag(w_io, width):
    cin, cout = w_io.shape
    D = np.zeros((width * cin, width * cout), np.float32)
    for xo in range(width):
        D[xo * cin:(xo + 1) * cin, xo * cout:(xo + 1) * cout] = w_io
    return D


def _col_interp_expanded(width, cout):
    """Column interpolation as a (W*Cout, 2W*Cout) matmul on the lane axis."""
    B = _interp_matrix(2 * width, width)
    M = np.zeros((width * cout, 2 * width * cout), np.float32)
    eye = np.eye(cout, dtype=np.float32)
    for j in range(2 * width):
        for w in range(width):
            v = B[j, w]
            if v != 0.0:
                M[w * cout:(w + 1) * cout, j * cout:(j + 1) * cout] += v * eye
    return M


def pack_params(params, H, W):
    """Fold BN scale into weights (f32), then cast packed weights to bf16."""
    w1 = np.asarray(params['w1'], np.float32) * np.asarray(params['s1'], np.float32)
    w2 = np.asarray(params['w2'], np.float32) * np.asarray(params['s2'], np.float32)
    w3 = np.asarray(params['w3'], np.float32) * np.asarray(params['s3'], np.float32)
    c_in, c_mid = w1.shape[2], w1.shape[3]
    c_out = w2.shape[3]

    b1 = np.tile(np.asarray(params['b1'], np.float32), W)[None, :]
    b23 = np.tile(np.asarray(params['b2'], np.float32)
                  + np.asarray(params['b3'], np.float32), W)[None, :]

    return dict(
        A1=jnp.asarray(_band_matrices(w1, W), jnp.bfloat16),
        A2=jnp.asarray(_band_matrices(w2, W), jnp.bfloat16),
        D3=jnp.asarray(_blockdiag(w3, W), jnp.bfloat16),
        b1=jnp.asarray(b1, jnp.float32),
        b23=jnp.asarray(b23, jnp.float32),
        Arow=jnp.asarray(_interp_matrix(2 * H, H), jnp.bfloat16),
        Bcol=jnp.asarray(_col_interp_expanded(W, c_out), jnp.bfloat16),
        c_in=c_in, c_mid=c_mid, c_out=c_out,
    )


# --------------------------------------------------------------------------
# Forward passes
# --------------------------------------------------------------------------
def expansive_block_apply_nhwc(down_nhwc, packed, skip_nhwc=None,
                               out_dtype=jnp.float32):
    """Primary entry point: NHWC in / NHWC out (no relayout passes).

    Set out_dtype=jnp.bfloat16 to halve the writeback if downstream allows.
    """
    N, H, W, c_in = down_nhwc.shape
    c_mid, c_out = packed['c_mid'], packed['c_out']
    x = down_nhwc.reshape(N, H, W * c_in).astype(jnp.bfloat16)  # lane-packed
    if skip_nhwc is None:
        y = _fused_call(x, packed, H=H, W=W, c_in=c_in, c_mid=c_mid,
                        c_out=c_out, upsample=False, out_dtype=out_dtype)
        return y.reshape(N, H, W, c_out)
    y = _fused_call(x, packed, H=H, W=W, c_in=c_in, c_mid=c_mid,
                    c_out=c_out, upsample=True, out_dtype=out_dtype)
    up = y.reshape(N, 2 * H, 2 * W, c_out)
    return jnp.concatenate([up, skip_nhwc.astype(up.dtype)], axis=-1)


def expansive_block_forward(down_nchw, packed, skip_nchw=None):
    """PyTorch-parity adapter (NCHW in / NCHW out). Prefer the NHWC entry
    point in real pipelines to avoid the relayout passes."""
    down_nhwc = jnp.transpose(down_nchw, (0, 2, 3, 1)).astype(jnp.float32)
    skip_nhwc = (None if skip_nchw is None
                 else jnp.transpose(skip_nchw, (0, 2, 3, 1)).astype(jnp.float32))
    out = expansive_block_apply_nhwc(down_nhwc, packed, skip_nhwc)
    return jnp.transpose(out, (0, 3, 1, 2))


# --------------------------------------------------------------------------
# Pure-JAX reference (f32, for correctness validation)
# --------------------------------------------------------------------------
def reference_forward(down_nchw, params, skip_nchw=None):
    x = jnp.transpose(down_nchw, (0, 2, 3, 1)).astype(jnp.float32)
    dn = ('NHWC', 'HWIO', 'NHWC')
    h = lax.conv_general_dilated(x, params['w1'], (1, 1), 'SAME',
                                 dimension_numbers=dn)
    h = jnp.maximum(h * params['s1'] + params['b1'], 0.0)
    out1 = lax.conv_general_dilated(h, params['w2'], (1, 1), 'SAME',
                                    dimension_numbers=dn)
    out1 = out1 * params['s2'] + params['b2']
    out2 = jnp.einsum('nhwc,cd->nhwd', x, params['w3']) * params['s3'] + params['b3']
    res = jnp.maximum(out1 + out2, 0.0)
    if skip_nchw is None:
        return jnp.transpose(res, (0, 3, 1, 2))
    _, H, W, _ = res.shape
    A = jnp.asarray(_interp_matrix(2 * H, H))
    B = jnp.asarray(_interp_matrix(2 * W, W))
    t = jnp.einsum('ih,nhwc->niwc', A, res)
    up = jnp.einsum('jw,niwc->nijc', B, t)
    skip_nhwc = jnp.transpose(skip_nchw, (0, 2, 3, 1)).astype(jnp.float32)
    out = jnp.concatenate([up, skip_nhwc], axis=-1)
    return jnp.transpose(out, (0, 3, 1, 2))


# --------------------------------------------------------------------------
# Main
# --------------------------------------------------------------------------
if __name__ == "__main__":
    key = jax.random.PRNGKey(0)
    k_param, k_down, k_skip = jax.random.split(key, 3)

    N, C_IN, C_MID, C_OUT = 2, 4, 8, 8
    H = W = 16
    C_SKIP = 4

    params = init_params(k_param, C_IN, C_MID, C_OUT)
    packed = pack_params(params, H, W)

    down = jax.random.normal(k_down, (N, C_IN, H, W), jnp.float32)            # NCHW
    skip = jax.random.normal(k_skip, (N, C_SKIP, 2 * H, 2 * W), jnp.float32)  # NCHW

    # path without skip (returns res_block)
    res = expansive_block_forward(down, packed, skip_nchw=None)
    jax.block_until_ready(res)
    assert res.shape == (N, C_OUT, H, W)

    # path with skip (fused 2x bilinear upsample + channel concat)
    out = expansive_block_forward(down, packed, skip_nchw=skip)
    jax.block_until_ready(out)
    assert out.shape == (N, C_OUT + C_SKIP, 2 * H, 2 * W)

    # correctness vs. pure-JAX f32 reference (bf16 weights/activations inside)
    res_ref = reference_forward(down, params, None)
    out_ref = reference_forward(down, params, skip)
    np.testing.assert_allclose(np.asarray(res), np.asarray(res_ref),
                               rtol=2e-2, atol=2e-2)
    np.testing.assert_allclose(np.asarray(out), np.asarray(out_ref),
                               rtol=2e-2, atol=2e-2)

    print("KERNEL_OK")
</pallas_src>

<mosaic_0001>
module attributes {stable_mosaic.version = 11 : i64} {
  func.func @fused_expansive_kernel(%arg0: i32, %arg1: memref<2x16x64xbf16, #tpu.memory_space<vmem>>, %arg2: memref<3x64x128xbf16, #tpu.memory_space<vmem>>, %arg3: memref<1x128xf32, #tpu.memory_space<vmem>>, %arg4: memref<3x128x128xbf16, #tpu.memory_space<vmem>>, %arg5: memref<64x128xbf16, #tpu.memory_space<vmem>>, %arg6: memref<1x128xf32, #tpu.memory_space<vmem>>, %arg7: memref<2x16x128xf32, #tpu.memory_space<vmem>>, %arg8: memref<36x64xf32, #tpu.memory_space<vmem>>, %arg9: memref<36x128xf32, #tpu.memory_space<vmem>>) attributes {dimension_semantics = [#tpu.dimension_semantics<parallel>], iteration_bounds = array<i64: 1>, scalar_prefetch = 0 : i64, scratch_operands = 2 : i64, tpu.core_type = #tpu.core_type<tc>, window_params = [{transform_indices = @transform_0, window_bounds = array<i64: 2, 16, 64>}, {pipeline_mode = #tpu.pipeline_mode<synchronous>, transform_indices = @transform_1, window_bounds = array<i64: 3, 64, 128>}, {pipeline_mode = #tpu.pipeline_mode<synchronous>, transform_indices = @transform_2, window_bounds = array<i64: 1, 128>}, {pipeline_mode = #tpu.pipeline_mode<synchronous>, transform_indices = @transform_3, window_bounds = array<i64: 3, 128, 128>}, {pipeline_mode = #tpu.pipeline_mode<synchronous>, transform_indices = @transform_4, window_bounds = array<i64: 64, 128>}, {pipeline_mode = #tpu.pipeline_mode<synchronous>, transform_indices = @transform_5, window_bounds = array<i64: 1, 128>}, {transform_indices = @transform_6, window_bounds = array<i64: 2, 16, 128>}]} {
    %c0 = arith.constant 0 : index
    %c0_0 = arith.constant 0 : index
    %c0_1 = arith.constant 0 : index
    %0 = vector.load %arg1[%c0, %c0_0, %c0_1] : memref<2x16x64xbf16, #tpu.memory_space<vmem>>, vector<2x16x64xbf16>
    %cst = arith.constant 0.000000e+00 : f32
    %1 = vector.broadcast %cst : f32 to vector<1x64xf32>
    %c0_2 = arith.constant 0 : index
    %c0_3 = arith.constant 0 : index
    %2 = vector.load %arg8[%c0_2, %c0_3] : memref<36x64xf32, #tpu.memory_space<vmem>>, vector<1x64xf32>
    tpu.vector_store %arg8[%c0_2, %c0_3], %1 {strides = array<i32>} : memref<36x64xf32, #tpu.memory_space<vmem>>, vector<1x64xf32>,
    %cst_4 = arith.constant 0.000000e+00 : f32
    %3 = vector.broadcast %cst_4 : f32 to vector<1x64xf32>
    %c17 = arith.constant 17 : index
    %c0_5 = arith.constant 0 : index
    %4 = vector.load %arg8[%c17, %c0_5] : memref<36x64xf32, #tpu.memory_space<vmem>>, vector<1x64xf32>
    tpu.vector_store %arg8[%c17, %c0_5], %3 {strides = array<i32>} : memref<36x64xf32, #tpu.memory_space<vmem>>, vector<1x64xf32>,
    %5 = vector.extract_strided_slice %0 {offsets = [0, 0, 0], sizes = [1, 16, 64], strides = [1, 1, 1]} : vector<2x16x64xbf16> to vector<1x16x64xbf16>
    %6 = vector.shape_cast %5 : vector<1x16x64xbf16> to vector<16x64xbf16>
    %7 = arith.extf %6 : vector<16x64xbf16> to vector<16x64xf32>
    %c1 = arith.constant 1 : index
    %c0_6 = arith.constant 0 : index
    %8 = vector.load %arg8[%c1, %c0_6] : memref<36x64xf32, #tpu.memory_space<vmem>>, vector<16x64xf32>
    tpu.vector_store %arg8[%c1, %c0_6], %7 {strides = array<i32>} : memref<36x64xf32, #tpu.memory_space<vmem>>, vector<16x64xf32>,
    %cst_7 = arith.constant 0.000000e+00 : f32
    %9 = vector.broadcast %cst_7 : f32 to vector<1x64xf32>
    %c18 = arith.constant 18 : index
    %c0_8 = arith.constant 0 : index
    %10 = vector.load %arg8[%c18, %c0_8] : memref<36x64xf32, #tpu.memory_space<vmem>>, vector<1x64xf32>
    tpu.vector_store %arg8[%c18, %c0_8], %9 {strides = array<i32>} : memref<36x64xf32, #tpu.memory_space<vmem>>, vector<1x64xf32>,
    %cst_9 = arith.constant 0.000000e+00 : f32
    %11 = vector.broadcast %cst_9 : f32 to vector<1x64xf32>
    %c35 = arith.constant 35 : index
    %c0_10 = arith.constant 0 : index
    %12 = vector.load %arg8[%c35, %c0_10] : memref<36x64xf32, #tpu.memory_space<vmem>>, vector<1x64xf32>
    tpu.vector_store %arg8[%c35, %c0_10], %11 {strides = array<i32>} : memref<36x64xf32, #tpu.memory_space<vmem>>, vector<1x64xf32>,
    %13 = vector.extract_strided_slice %0 {offsets = [1, 0, 0], sizes = [1, 16, 64], strides = [1, 1, 1]} : vector<2x16x64xbf16> to vector<1x16x64xbf16>
    %14 = vector.shape_cast %13 : vector<1x16x64xbf16> to vector<16x64xbf16>
    %15 = arith.extf %14 : vector<16x64xbf16> to vector<16x64xf32>
    %c19 = arith.constant 19 : index
    %c0_11 = arith.constant 0 : index
    %16 = vector.load %arg8[%c19, %c0_11] : memref<36x64xf32, #tpu.memory_space<vmem>>, vector<16x64xf32>
    tpu.vector_store %arg8[%c19, %c0_11], %15 {strides = array<i32>} : memref<36x64xf32, #tpu.memory_space<vmem>>, vector<16x64xf32>,
    %c0_12 = arith.constant 0 : index
    %c0_13 = arith.constant 0 : index
    %17 = vector.load %arg8[%c0_12, %c0_13] : memref<36x64xf32, #tpu.memory_space<vmem>>, vector<34x64xf32>
    %18 = arith.truncf %17 : vector<34x64xf32> to vector<34x64xbf16>
    %c0_14 = arith.constant 0 : index
    %c0_15 = arith.constant 0 : index
    %c0_16 = arith.constant 0 : index
    %19 = vector.load %arg2[%c0_14, %c0_15, %c0_16] : memref<3x64x128xbf16, #tpu.memory_space<vmem>>, vector<1x64x128xbf16>
    %20 = vector.shape_cast %19 : vector<1x64x128xbf16> to vector<64x128xbf16>
    %cst_17 = arith.constant dense<0.000000e+00> : vector<34x128xf32>
    %21 = tpu.matmul %18, %20, %cst_17 {dimension_numbers = #tpu.dot_dimension_numbers<[1], [0], [0], [1], [0, 0, 1, 1], [], []>} : vector<34x64xbf16>, vector<64x128xbf16>, vector<34x128xf32> -> vector<34x128xf32>
    %c1_18 = arith.constant 1 : index
    %c0_19 = arith.constant 0 : index
    %22 = vector.load %arg8[%c1_18, %c0_19] : memref<36x64xf32, #tpu.memory_space<vmem>>, vector<34x64xf32>
    %23 = arith.truncf %22 : vector<34x64xf32> to vector<34x64xbf16>
    %c1_20 = arith.constant 1 : index
    %c0_21 = arith.constant 0 : index
    %c0_22 = arith.constant 0 : index
    %24 = vector.load %arg2[%c1_20, %c0_21, %c0_22] : memref<3x64x128xbf16, #tpu.memory_space<vmem>>, vector<1x64x128xbf16>
    %25 = vector.shape_cast %24 : vector<1x64x128xbf16> to vector<64x128xbf16>
    %cst_23 = arith.constant dense<0.000000e+00> : vector<34x128xf32>
    %26 = tpu.matmul %23, %25, %cst_23 {dimension_numbers = #tpu.dot_dimension_numbers<[1], [0], [0], [1], [0, 0, 1, 1], [], []>} : vector<34x64xbf16>, vector<64x128xbf16>, vector<34x128xf32> -> vector<34x128xf32>
    %27 = arith.addf %21, %26 : vector<34x128xf32>
    %c2 = arith.constant 2 : index
    %c0_24 = arith.constant 0 : index
    %28 = vector.load %arg8[%c2, %c0_24] : memref<36x64xf32, #tpu.memory_space<vmem>>, vector<34x64xf32>
    %29 = arith.truncf %28 : vector<34x64xf32> to vector<34x64xbf16>
    %c2_25 = arith.constant 2 : index
    %c0_26 = arith.constant 0 : index
    %c0_27 = arith.constant 0 : index
    %30 = vector.load %arg2[%c2_25, %c0_26, %c0_27] : memref<3x64x128xbf16, #tpu.memory_space<vmem>>, vector<1x64x128xbf16>
    %31 = vector.shape_cast %30 : vector<1x64x128xbf16> to vector<64x128xbf16>
    %cst_28 = arith.constant dense<0.000000e+00> : vector<34x128xf32>
    %32 = tpu.matmul %29, %31, %cst_28 {dimension_numbers = #tpu.dot_dimension_numbers<[1], [0], [0], [1], [0, 0, 1, 1], [], []>} : vector<34x64xbf16>, vector<64x128xbf16>, vector<34x128xf32> -> vector<34x128xf32>
    %33 = arith.addf %27, %32 : vector<34x128xf32>
    %c0_29 = arith.constant 0 : index
    %c0_30 = arith.constant 0 : index
    %34 = vector.load %arg3[%c0_29, %c0_30] : memref<1x128xf32, #tpu.memory_space<vmem>>, vector<1x128xf32>
    %35 = vector.broadcast %34 : vector<1x128xf32> to vector<34x128xf32>
    %36 = arith.addf %33, %35 : vector<34x128xf32>
    %cst_31 = arith.constant 0.000000e+00 : f32
    %37 = vector.broadcast %cst_31 : f32 to vector<34x128xf32>
    %38 = arith.maximumf %36, %37 : vector<34x128xf32>
    %cst_32 = arith.constant 0.000000e+00 : f32
    %39 = vector.broadcast %cst_32 : f32 to vector<1x128xf32>
    %c0_33 = arith.constant 0 : index
    %c0_34 = arith.constant 0 : index
    %40 = vector.load %arg9[%c0_33, %c0_34] : memref<36x128xf32, #tpu.memory_space<vmem>>, vector<1x128xf32>
    tpu.vector_store %arg9[%c0_33, %c0_34], %39 {strides = array<i32>} : memref<36x128xf32, #tpu.memory_space<vmem>>, vector<1x128xf32>,
    %cst_35 = arith.constant 0.000000e+00 : f32
    %41 = vector.broadcast %cst_35 : f32 to vector<1x128xf32>
    %c17_36 = arith.constant 17 : index
    %c0_37 = arith.constant 0 : index
    %42 = vector.load %arg9[%c17_36, %c0_37] : memref<36x128xf32, #tpu.memory_space<vmem>>, vector<1x128xf32>
    tpu.vector_store %arg9[%c17_36, %c0_37], %41 {strides = array<i32>} : memref<36x128xf32, #tpu.memory_space<vmem>>, vector<1x128xf32>,
    %43 = vector.extract_strided_slice %38 {offsets = [0, 0], sizes = [16, 128], strides = [1, 1]} : vector<34x128xf32> to vector<16x128xf32>
    %c1_38 = arith.constant 1 : index
    %c0_39 = arith.constant 0 : index
    %44 = vector.load %arg9[%c1_38, %c0_39] : memref<36x128xf32, #tpu.memory_space<vmem>>, vector<16x128xf32>
    tpu.vector_store %arg9[%c1_38, %c0_39], %43 {strides = array<i32>} : memref<36x128xf32, #tpu.memory_space<vmem>>, vector<16x128xf32>,
    %cst_40 = arith.constant 0.000000e+00 : f32
    %45 = vector.broadcast %cst_40 : f32 to vector<1x128xf32>
    %c18_41 = arith.constant 18 : index
    %c0_42 = arith.constant 0 : index
    %46 = vector.load %arg9[%c18_41, %c0_42] : memref<36x128xf32, #tpu.memory_space<vmem>>, vector<1x128xf32>
    tpu.vector_store %arg9[%c18_41, %c0_42], %45 {strides = array<i32>} : memref<36x128xf32, #tpu.memory_space<vmem>>, vector<1x128xf32>,
    %cst_43 = arith.constant 0.000000e+00 : f32
    %47 = vector.broadcast %cst_43 : f32 to vector<1x128xf32>
    %c35_44 = arith.constant 35 : index
    %c0_45 = arith.constant 0 : index
    %48 = vector.load %arg9[%c35_44, %c0_45] : memref<36x128xf32, #tpu.memory_space<vmem>>, vector<1x128xf32>
    tpu.vector_store %arg9[%c35_44, %c0_45], %47 {strides = array<i32>} : memref<36x128xf32, #tpu.memory_space<vmem>>, vector<1x128xf32>,
    %49 = vector.extract_strided_slice %38 {offsets = [18, 0], sizes = [16, 128], strides = [1, 1]} : vector<34x128xf32> to vector<16x128xf32>
    %c19_46 = arith.constant 19 : index
    %c0_47 = arith.constant 0 : index
    %50 = vector.load %arg9[%c19_46, %c0_47] : memref<36x128xf32, #tpu.memory_space<vmem>>, vector<16x128xf32>
    tpu.vector_store %arg9[%c19_46, %c0_47], %49 {strides = array<i32>} : memref<36x128xf32, #tpu.memory_space<vmem>>, vector<16x128xf32>,
    %c0_48 = arith.constant 0 : index
    %c0_49 = arith.constant 0 : index
    %51 = vector.load %arg9[%c0_48, %c0_49] : memref<36x128xf32, #tpu.memory_space<vmem>>, vector<34x128xf32>
    %52 = arith.truncf %51 : vector<34x128xf32> to vector<34x128xbf16>
    %c0_50 = arith.constant 0 : index
    %c0_51 = arith.constant 0 : index
    %c0_52 = arith.constant 0 : index
    %53 = vector.load %arg4[%c0_50, %c0_51, %c0_52] : memref<3x128x128xbf16, #tpu.memory_space<vmem>>, vector<1x128x128xbf16>
    %54 = vector.shape_cast %53 : vector<1x128x128xbf16> to vector<128x128xbf16>
    %cst_53 = arith.constant dense<0.000000e+00> : vector<34x128xf32>
    %55 = tpu.matmul %52, %54, %cst_53 {dimension_numbers = #tpu.dot_dimension_numbers<[1], [0], [0], [1], [0, 0, 1, 1], [], []>} : vector<34x128xbf16>, vector<128x128xbf16>, vector<34x128xf32> -> vector<34x128xf32>
    %c1_54 = arith.constant 1 : index
    %c0_55 = arith.constant 0 : index
    %56 = vector.load %arg9[%c1_54, %c0_55] : memref<36x128xf32, #tpu.memory_space<vmem>>, vector<34x128xf32>
    %57 = arith.truncf %56 : vector<34x128xf32> to vector<34x128xbf16>
    %c1_56 = arith.constant 1 : index
    %c0_57 = arith.constant 0 : index
    %c0_58 = arith.constant 0 : index
    %58 = vector.load %arg4[%c1_56, %c0_57, %c0_58] : memref<3x128x128xbf16, #tpu.memory_space<vmem>>, vector<1x128x128xbf16>
    %59 = vector.shape_cast %58 : vector<1x128x128xbf16> to vector<128x128xbf16>
    %cst_59 = arith.constant dense<0.000000e+00> : vector<34x128xf32>
    %60 = tpu.matmul %57, %59, %cst_59 {dimension_numbers = #tpu.dot_dimension_numbers<[1], [0], [0], [1], [0, 0, 1, 1], [], []>} : vector<34x128xbf16>, vector<128x128xbf16>, vector<34x128xf32> -> vector<34x128xf32>
    %61 = arith.addf %55, %60 : vector<34x128xf32>
    %c2_60 = arith.constant 2 : index
    %c0_61 = arith.constant 0 : index
    %62 = vector.load %arg9[%c2_60, %c0_61] : memref<36x128xf32, #tpu.memory_space<vmem>>, vector<34x128xf32>
    %63 = arith.truncf %62 : vector<34x128xf32> to vector<34x128xbf16>
    %c2_62 = arith.constant 2 : index
    %c0_63 = arith.constant 0 : index
    %c0_64 = arith.constant 0 : index
    %64 = vector.load %arg4[%c2_62, %c0_63, %c0_64] : memref<3x128x128xbf16, #tpu.memory_space<vmem>>, vector<1x128x128xbf16>
    %65 = vector.shape_cast %64 : vector<1x128x128xbf16> to vector<128x128xbf16>
    %cst_65 = arith.constant dense<0.000000e+00> : vector<34x128xf32>
    %66 = tpu.matmul %63, %65, %cst_65 {dimension_numbers = #tpu.dot_dimension_numbers<[1], [0], [0], [1], [0, 0, 1, 1], [], []>} : vector<34x128xbf16>, vector<128x128xbf16>, vector<34x128xf32> -> vector<34x128xf32>
    %67 = arith.addf %61, %66 : vector<34x128xf32>
    %68 = vector.shape_cast %0 : vector<2x16x64xbf16> to vector<32x64xbf16>
    %c0_66 = arith.constant 0 : index
    %c0_67 = arith.constant 0 : index
    %69 = vector.load %arg5[%c0_66, %c0_67] : memref<64x128xbf16, #tpu.memory_space<vmem>>, vector<64x128xbf16>
    %cst_68 = arith.constant dense<0.000000e+00> : vector<32x128xf32>
    %70 = tpu.matmul %68, %69, %cst_68 {dimension_numbers = #tpu.dot_dimension_numbers<[1], [0], [0], [1], [0, 0, 1, 1], [], []>} : vector<32x64xbf16>, vector<64x128xbf16>, vector<32x128xf32> -> vector<32x128xf32>
    %c0_69 = arith.constant 0 : index
    %c0_70 = arith.constant 0 : index
    %71 = vector.load %arg6[%c0_69, %c0_70] : memref<1x128xf32, #tpu.memory_space<vmem>>, vector<1x128xf32>
    %72 = vector.extract_strided_slice %67 {offsets = [0, 0], sizes = [16, 128], strides = [1, 1]} : vector<34x128xf32> to vector<16x128xf32>
    %73 = vector.extract_strided_slice %70 {offsets = [0, 0], sizes = [16, 128], strides = [1, 1]} : vector<32x128xf32> to vector<16x128xf32>
    %74 = arith.addf %72, %73 : vector<16x128xf32>
    %75 = vector.broadcast %71 : vector<1x128xf32> to vector<16x128xf32>
    %76 = arith.addf %74, %75 : vector<16x128xf32>
    %cst_71 = arith.constant 0.000000e+00 : f32
    %77 = vector.broadcast %cst_71 : f32 to vector<16x128xf32>
    %78 = arith.maximumf %76, %77 : vector<16x128xf32>
    %c0_72 = arith.constant 0 : index
    %c0_73 = arith.constant 0 : index
    %c0_74 = arith.constant 0 : index
    %79 = vector.load %arg7[%c0_72, %c0_73, %c0_74] : memref<2x16x128xf32, #tpu.memory_space<vmem>>, vector<1x16x128xf32>
    %80 = vector.shape_cast %79 : vector<1x16x128xf32> to vector<16x128xf32>
    %81 = vector.shape_cast %78 : vector<16x128xf32> to vector<1x16x128xf32>
    tpu.vector_store %arg7[%c0_72, %c0_73, %c0_74], %81 {strides = array<i32>} : memref<2x16x128xf32, #tpu.memory_space<vmem>>, vector<1x16x128xf32>,
    %82 = vector.extract_strided_slice %67 {offsets = [18, 0], sizes = [16, 128], strides = [1, 1]} : vector<34x128xf32> to vector<16x128xf32>
    %83 = vector.extract_strided_slice %70 {offsets = [16, 0], sizes = [16, 128], strides = [1, 1]} : vector<32x128xf32> to vector<16x128xf32>
    %84 = arith.addf %82, %83 : vector<16x128xf32>
    %85 = vector.broadcast %71 : vector<1x128xf32> to vector<16x128xf32>
    %86 = arith.addf %84, %85 : vector<16x128xf32>
    %cst_75 = arith.constant 0.000000e+00 : f32
    %87 = vector.broadcast %cst_75 : f32 to vector<16x128xf32>
    %88 = arith.maximumf %86, %87 : vector<16x128xf32>
    %c1_76 = arith.constant 1 : index
    %c0_77 = arith.constant 0 : index
    %c0_78 = arith.constant 0 : index
    %89 = vector.load %arg7[%c1_76, %c0_77, %c0_78] : memref<2x16x128xf32, #tpu.memory_space<vmem>>, vector<1x16x128xf32>
    %90 = vector.shape_cast %89 : vector<1x16x128xf32> to vector<16x128xf32>
    %91 = vector.shape_cast %88 : vector<16x128xf32> to vector<1x16x128xf32>
    tpu.vector_store %arg7[%c1_76, %c0_77, %c0_78], %91 {strides = array<i32>} : memref<2x16x128xf32, #tpu.memory_space<vmem>>, vector<1x16x128xf32>,
    return
  }
  func.func @transform_0(%arg0: i32) -> (i32, i32, i32) {
    %c0_i32 = arith.constant 0 : i32
    %c0_i32_0 = arith.constant 0 : i32
    %c0_i32_1 = arith.constant 0 : i32
    return %arg0, %c0_i32, %c0_i32_0 : i32, i32, i32
  }
  func.func @transform_1(%arg0: i32) -> (i32, i32, i32) {
    %c0_i32 = arith.constant 0 : i32
    %c0_i32_0 = arith.constant 0 : i32
    %c0_i32_1 = arith.constant 0 : i32
    %c0_i32_2 = arith.constant 0 : i32
    return %c0_i32, %c0_i32_0, %c0_i32_1 : i32, i32, i32
  }
  func.func @transform_2(%arg0: i32) -> (i32, i32) {
    %c0_i32 = arith.constant 0 : i32
    %c0_i32_0 = arith.constant 0 : i32
    %c0_i32_1 = arith.constant 0 : i32
    return %c0_i32, %c0_i32_0 : i32, i32
  }
  func.func @transform_3(%arg0: i32) -> (i32, i32, i32) {
    %c0_i32 = arith.constant 0 : i32
    %c0_i32_0 = arith.constant 0 : i32
    %c0_i32_1 = arith.constant 0 : i32
    %c0_i32_2 = arith.constant 0 : i32
    return %c0_i32, %c0_i32_0, %c0_i32_1 : i32, i32, i32
  }
  func.func @transform_4(%arg0: i32) -> (i32, i32) {
    %c0_i32 = arith.constant 0 : i32
    %c0_i32_0 = arith.constant 0 : i32
    %c0_i32_1 = arith.constant 0 : i32
    return %c0_i32, %c0_i32_0 : i32, i32
  }
  func.func @transform_5(%arg0: i32) -> (i32, i32) {
    %c0_i32 = arith.constant 0 : i32
    %c0_i32_0 = arith.constant 0 : i32
    %c0_i32_1 = arith.constant 0 : i32
    return %c0_i32, %c0_i32_0 : i32, i32
  }
  func.func @transform_6(%arg0: i32) -> (i32, i32, i32) {
    %c0_i32 = arith.constant 0 : i32
    %c0_i32_0 = arith.constant 0 : i32
    %c0_i32_1 = arith.constant 0 : i32
    return %arg0, %c0_i32, %c0_i32_0 : i32, i32, i32
  }
}

module attributes {stable_mosaic.version = 11 : i64} {
  func.func @fused_expansive_kernel(%arg0: i32, %arg1: memref<2x16x64xbf16, #tpu.memory_space<vmem>>, %arg2: memref<3x64x128xbf16, #tpu.memory_space<vmem>>, %arg3: memref<1x128xf32, #tpu.memory_space<vmem>>, %arg4: memref<3x128x128xbf16, #tpu.memory_space<vmem>>, %arg5: memref<64x128xbf16, #tpu.memory_space<vmem>>, %arg6: memref<1x128xf32, #tpu.memory_space<vmem>>, %arg7: memref<2x16x128xf32, #tpu.memory_space<vmem>>, %arg8: memref<36x64xf32, #tpu.memory_space<vmem>>, %arg9: memref<36x128xf32, #tpu.memory_space<vmem>>) attributes {dimension_semantics = [#tpu.dimension_semantics<parallel>], iteration_bounds = array<i64: 1>, scalar_prefetch = 0 : i64, scratch_operands = 2 : i64, tpu.core_type = #tpu.core_type<tc>, window_params = [{transform_indices = @transform_0, window_bounds = array<i64: 2, 16, 64>}, {pipeline_mode = #tpu.pipeline_mode<synchronous>, transform_indices = @transform_1, window_bounds = array<i64: 3, 64, 128>}, {pipeline_mode = #tpu.pipeline_mode<synchronous>, transform_indices = @transform_2, window_bounds = array<i64: 1, 128>}, {pipeline_mode = #tpu.pipeline_mode<synchronous>, transform_indices = @transform_3, window_bounds = array<i64: 3, 128, 128>}, {pipeline_mode = #tpu.pipeline_mode<synchronous>, transform_indices = @transform_4, window_bounds = array<i64: 64, 128>}, {pipeline_mode = #tpu.pipeline_mode<synchronous>, transform_indices = @transform_5, window_bounds = array<i64: 1, 128>}, {transform_indices = @transform_6, window_bounds = array<i64: 2, 16, 128>}]} {
    %c0 = arith.constant 0 : index
    %c0_0 = arith.constant 0 : index
    %c0_1 = arith.constant 0 : index
    %0 = vector.load %arg1[%c0, %c0_0, %c0_1] : memref<2x16x64xbf16, #tpu.memory_space<vmem>>, vector<2x16x64xbf16>
    %cst = arith.constant 0.000000e+00 : f32
    %1 = vector.broadcast %cst : f32 to vector<1x64xf32>
    %c0_2 = arith.constant 0 : index
    %c0_3 = arith.constant 0 : index
    %2 = vector.load %arg8[%c0_2, %c0_3] : memref<36x64xf32, #tpu.memory_space<vmem>>, vector<1x64xf32>
    tpu.vector_store %arg8[%c0_2, %c0_3], %1 {strides = array<i32>} : memref<36x64xf32, #tpu.memory_space<vmem>>, vector<1x64xf32>,
    %cst_4 = arith.constant 0.000000e+00 : f32
    %3 = vector.broadcast %cst_4 : f32 to vector<1x64xf32>
    %c17 = arith.constant 17 : index
    %c0_5 = arith.constant 0 : index
    %4 = vector.load %arg8[%c17, %c0_5] : memref<36x64xf32, #tpu.memory_space<vmem>>, vector<1x64xf32>
    tpu.vector_store %arg8[%c17, %c0_5], %3 {strides = array<i32>} : memref<36x64xf32, #tpu.memory_space<vmem>>, vector<1x64xf32>,
    %5 = vector.extract_strided_slice %0 {offsets = [0, 0, 0], sizes = [1, 16, 64], strides = [1, 1, 1]} : vector<2x16x64xbf16> to vector<1x16x64xbf16>
    %6 = vector.shape_cast %5 : vector<1x16x64xbf16> to vector<16x64xbf16>
    %7 = arith.extf %6 : vector<16x64xbf16> to vector<16x64xf32>
    %c1 = arith.constant 1 : index
    %c0_6 = arith.constant 0 : index
    %8 = vector.load %arg8[%c1, %c0_6] : memref<36x64xf32, #tpu.memory_space<vmem>>, vector<16x64xf32>
    tpu.vector_store %arg8[%c1, %c0_6], %7 {strides = array<i32>} : memref<36x64xf32, #tpu.memory_space<vmem>>, vector<16x64xf32>,
    %cst_7 = arith.constant 0.000000e+00 : f32
    %9 = vector.broadcast %cst_7 : f32 to vector<1x64xf32>
    %c18 = arith.constant 18 : index
    %c0_8 = arith.constant 0 : index
    %10 = vector.load %arg8[%c18, %c0_8] : memref<36x64xf32, #tpu.memory_space<vmem>>, vector<1x64xf32>
    tpu.vector_store %arg8[%c18, %c0_8], %9 {strides = array<i32>} : memref<36x64xf32, #tpu.memory_space<vmem>>, vector<1x64xf32>,
    %cst_9 = arith.constant 0.000000e+00 : f32
    %11 = vector.broadcast %cst_9 : f32 to vector<1x64xf32>
    %c35 = arith.constant 35 : index
    %c0_10 = arith.constant 0 : index
    %12 = vector.load %arg8[%c35, %c0_10] : memref<36x64xf32, #tpu.memory_space<vmem>>, vector<1x64xf32>
    tpu.vector_store %arg8[%c35, %c0_10], %11 {strides = array<i32>} : memref<36x64xf32, #tpu.memory_space<vmem>>, vector<1x64xf32>,
    %13 = vector.extract_strided_slice %0 {offsets = [1, 0, 0], sizes = [1, 16, 64], strides = [1, 1, 1]} : vector<2x16x64xbf16> to vector<1x16x64xbf16>
    %14 = vector.shape_cast %13 : vector<1x16x64xbf16> to vector<16x64xbf16>
    %15 = arith.extf %14 : vector<16x64xbf16> to vector<16x64xf32>
    %c19 = arith.constant 19 : index
    %c0_11 = arith.constant 0 : index
    %16 = vector.load %arg8[%c19, %c0_11] : memref<36x64xf32, #tpu.memory_space<vmem>>, vector<16x64xf32>
    tpu.vector_store %arg8[%c19, %c0_11], %15 {strides = array<i32>} : memref<36x64xf32, #tpu.memory_space<vmem>>, vector<16x64xf32>,
    %c0_12 = arith.constant 0 : index
    %c0_13 = arith.constant 0 : index
    %17 = vector.load %arg8[%c0_12, %c0_13] : memref<36x64xf32, #tpu.memory_space<vmem>>, vector<34x64xf32>
    %18 = arith.truncf %17 : vector<34x64xf32> to vector<34x64xbf16>
    %c0_14 = arith.constant 0 : index
    %c0_15 = arith.constant 0 : index
    %c0_16 = arith.constant 0 : index
    %19 = vector.load %arg2[%c0_14, %c0_15, %c0_16] : memref<3x64x128xbf16, #tpu.memory_space<vmem>>, vector<1x64x128xbf16>
    %20 = vector.shape_cast %19 : vector<1x64x128xbf16> to vector<64x128xbf16>
    %cst_17 = arith.constant dense<0.000000e+00> : vector<34x128xf32>
    %21 = tpu.matmul %18, %20, %cst_17 {dimension_numbers = #tpu.dot_dimension_numbers<[1], [0], [0], [1], [0, 0, 1, 1], [], []>} : vector<34x64xbf16>, vector<64x128xbf16>, vector<34x128xf32> -> vector<34x128xf32>
    %c1_18 = arith.constant 1 : index
    %c0_19 = arith.constant 0 : index
    %22 = vector.load %arg8[%c1_18, %c0_19] : memref<36x64xf32, #tpu.memory_space<vmem>>, vector<34x64xf32>
    %23 = arith.truncf %22 : vector<34x64xf32> to vector<34x64xbf16>
    %c1_20 = arith.constant 1 : index
    %c0_21 = arith.constant 0 : index
    %c0_22 = arith.constant 0 : index
    %24 = vector.load %arg2[%c1_20, %c0_21, %c0_22] : memref<3x64x128xbf16, #tpu.memory_space<vmem>>, vector<1x64x128xbf16>
    %25 = vector.shape_cast %24 : vector<1x64x128xbf16> to vector<64x128xbf16>
    %cst_23 = arith.constant dense<0.000000e+00> : vector<34x128xf32>
    %26 = tpu.matmul %23, %25, %cst_23 {dimension_numbers = #tpu.dot_dimension_numbers<[1], [0], [0], [1], [0, 0, 1, 1], [], []>} : vector<34x64xbf16>, vector<64x128xbf16>, vector<34x128xf32> -> vector<34x128xf32>
    %27 = arith.addf %21, %26 : vector<34x128xf32>
    %c2 = arith.constant 2 : index
    %c0_24 = arith.constant 0 : index
    %28 = vector.load %arg8[%c2, %c0_24] : memref<36x64xf32, #tpu.memory_space<vmem>>, vector<34x64xf32>
    %29 = arith.truncf %28 : vector<34x64xf32> to vector<34x64xbf16>
    %c2_25 = arith.constant 2 : index
    %c0_26 = arith.constant 0 : index
    %c0_27 = arith.constant 0 : index
    %30 = vector.load %arg2[%c2_25, %c0_26, %c0_27] : memref<3x64x128xbf16, #tpu.memory_space<vmem>>, vector<1x64x128xbf16>
    %31 = vector.shape_cast %30 : vector<1x64x128xbf16> to vector<64x128xbf16>
    %cst_28 = arith.constant dense<0.000000e+00> : vector<34x128xf32>
    %32 = tpu.matmul %29, %31, %cst_28 {dimension_numbers = #tpu.dot_dimension_numbers<[1], [0], [0], [1], [0, 0, 1, 1], [], []>} : vector<34x64xbf16>, vector<64x128xbf16>, vector<34x128xf32> -> vector<34x128xf32>
    %33 = arith.addf %27, %32 : vector<34x128xf32>
    %c0_29 = arith.constant 0 : index
    %c0_30 = arith.constant 0 : index
    %34 = vector.load %arg3[%c0_29, %c0_30] : memref<1x128xf32, #tpu.memory_space<vmem>>, vector<1x128xf32>
    %35 = vector.broadcast %34 : vector<1x128xf32> to vector<34x128xf32>
    %36 = arith.addf %33, %35 : vector<34x128xf32>
    %cst_31 = arith.constant 0.000000e+00 : f32
    %37 = vector.broadcast %cst_31 : f32 to vector<34x128xf32>
    %38 = arith.maximumf %36, %37 : vector<34x128xf32>
    %cst_32 = arith.constant 0.000000e+00 : f32
    %39 = vector.broadcast %cst_32 : f32 to vector<1x128xf32>
    %c0_33 = arith.constant 0 : index
    %c0_34 = arith.constant 0 : index
    %40 = vector.load %arg9[%c0_33, %c0_34] : memref<36x128xf32, #tpu.memory_space<vmem>>, vector<1x128xf32>
    tpu.vector_store %arg9[%c0_33, %c0_34], %39 {strides = array<i32>} : memref<36x128xf32, #tpu.memory_space<vmem>>, vector<1x128xf32>,
    %cst_35 = arith.constant 0.000000e+00 : f32
    %41 = vector.broadcast %cst_35 : f32 to vector<1x128xf32>
    %c17_36 = arith.constant 17 : index
    %c0_37 = arith.constant 0 : index
    %42 = vector.load %arg9[%c17_36, %c0_37] : memref<36x128xf32, #tpu.memory_space<vmem>>, vector<1x128xf32>
    tpu.vector_store %arg9[%c17_36, %c0_37], %41 {strides = array<i32>} : memref<36x128xf32, #tpu.memory_space<vmem>>, vector<1x128xf32>,
    %43 = vector.extract_strided_slice %38 {offsets = [0, 0], sizes = [16, 128], strides = [1, 1]} : vector<34x128xf32> to vector<16x128xf32>
    %c1_38 = arith.constant 1 : index
    %c0_39 = arith.constant 0 : index
    %44 = vector.load %arg9[%c1_38, %c0_39] : memref<36x128xf32, #tpu.memory_space<vmem>>, vector<16x128xf32>
    tpu.vector_store %arg9[%c1_38, %c0_39], %43 {strides = array<i32>} : memref<36x128xf32, #tpu.memory_space<vmem>>, vector<16x128xf32>,
    %cst_40 = arith.constant 0.000000e+00 : f32
    %45 = vector.broadcast %cst_40 : f32 to vector<1x128xf32>
    %c18_41 = arith.constant 18 : index
    %c0_42 = arith.constant 0 : index
    %46 = vector.load %arg9[%c18_41, %c0_42] : memref<36x128xf32, #tpu.memory_space<vmem>>, vector<1x128xf32>
    tpu.vector_store %arg9[%c18_41, %c0_42], %45 {strides = array<i32>} : memref<36x128xf32, #tpu.memory_space<vmem>>, vector<1x128xf32>,
    %cst_43 = arith.constant 0.000000e+00 : f32
    %47 = vector.broadcast %cst_43 : f32 to vector<1x128xf32>
    %c35_44 = arith.constant 35 : index
    %c0_45 = arith.constant 0 : index
    %48 = vector.load %arg9[%c35_44, %c0_45] : memref<36x128xf32, #tpu.memory_space<vmem>>, vector<1x128xf32>
    tpu.vector_store %arg9[%c35_44, %c0_45], %47 {strides = array<i32>} : memref<36x128xf32, #tpu.memory_space<vmem>>, vector<1x128xf32>,
    %49 = vector.extract_strided_slice %38 {offsets = [18, 0], sizes = [16, 128], strides = [1, 1]} : vector<34x128xf32> to vector<16x128xf32>
    %c19_46 = arith.constant 19 : index
    %c0_47 = arith.constant 0 : index
    %50 = vector.load %arg9[%c19_46, %c0_47] : memref<36x128xf32, #tpu.memory_space<vmem>>, vector<16x128xf32>
    tpu.vector_store %arg9[%c19_46, %c0_47], %49 {strides = array<i32>} : memref<36x128xf32, #tpu.memory_space<vmem>>, vector<16x128xf32>,
    %c0_48 = arith.constant 0 : index
    %c0_49 = arith.constant 0 : index
    %51 = vector.load %arg9[%c0_48, %c0_49] : memref<36x128xf32, #tpu.memory_space<vmem>>, vector<34x128xf32>
    %52 = arith.truncf %51 : vector<34x128xf32> to vector<34x128xbf16>
    %c0_50 = arith.constant 0 : index
    %c0_51 = arith.constant 0 : index
    %c0_52 = arith.constant 0 : index
    %53 = vector.load %arg4[%c0_50, %c0_51, %c0_52] : memref<3x128x128xbf16, #tpu.memory_space<vmem>>, vector<1x128x128xbf16>
    %54 = vector.shape_cast %53 : vector<1x128x128xbf16> to vector<128x128xbf16>
    %cst_53 = arith.constant dense<0.000000e+00> : vector<34x128xf32>
    %55 = tpu.matmul %52, %54, %cst_53 {dimension_numbers = #tpu.dot_dimension_numbers<[1], [0], [0], [1], [0, 0, 1, 1], [], []>} : vector<34x128xbf16>, vector<128x128xbf16>, vector<34x128xf32> -> vector<34x128xf32>
    %c1_54 = arith.constant 1 : index
    %c0_55 = arith.constant 0 : index
    %56 = vector.load %arg9[%c1_54, %c0_55] : memref<36x128xf32, #tpu.memory_space<vmem>>, vector<34x128xf32>
    %57 = arith.truncf %56 : vector<34x128xf32> to vector<34x128xbf16>
    %c1_56 = arith.constant 1 : index
    %c0_57 = arith.constant 0 : index
    %c0_58 = arith.constant 0 : index
    %58 = vector.load %arg4[%c1_56, %c0_57, %c0_58] : memref<3x128x128xbf16, #tpu.memory_space<vmem>>, vector<1x128x128xbf16>
    %59 = vector.shape_cast %58 : vector<1x128x128xbf16> to vector<128x128xbf16>
    %cst_59 = arith.constant dense<0.000000e+00> : vector<34x128xf32>
    %60 = tpu.matmul %57, %59, %cst_59 {dimension_numbers = #tpu.dot_dimension_numbers<[1], [0], [0], [1], [0, 0, 1, 1], [], []>} : vector<34x128xbf16>, vector<128x128xbf16>, vector<34x128xf32> -> vector<34x128xf32>
    %61 = arith.addf %55, %60 : vector<34x128xf32>
    %c2_60 = arith.constant 2 : index
    %c0_61 = arith.constant 0 : index
    %62 = vector.load %arg9[%c2_60, %c0_61] : memref<36x128xf32, #tpu.memory_space<vmem>>, vector<34x128xf32>
    %63 = arith.truncf %62 : vector<34x128xf32> to vector<34x128xbf16>
    %c2_62 = arith.constant 2 : index
    %c0_63 = arith.constant 0 : index
    %c0_64 = arith.constant 0 : index
    %64 = vector.load %arg4[%c2_62, %c0_63, %c0_64] : memref<3x128x128xbf16, #tpu.memory_space<vmem>>, vector<1x128x128xbf16>
    %65 = vector.shape_cast %64 : vector<1x128x128xbf16> to vector<128x128xbf16>
    %cst_65 = arith.constant dense<0.000000e+00> : vector<34x128xf32>
    %66 = tpu.matmul %63, %65, %cst_65 {dimension_numbers = #tpu.dot_dimension_numbers<[1], [0], [0], [1], [0, 0, 1, 1], [], []>} : vector<34x128xbf16>, vector<128x128xbf16>, vector<34x128xf32> -> vector<34x128xf32>
    %67 = arith.addf %61, %66 : vector<34x128xf32>
    %68 = vector.shape_cast %0 : vector<2x16x64xbf16> to vector<32x64xbf16>
    %c0_66 = arith.constant 0 : index
    %c0_67 = arith.constant 0 : index
    %69 = vector.load %arg5[%c0_66, %c0_67] : memref<64x128xbf16, #tpu.memory_space<vmem>>, vector<64x128xbf16>
    %cst_68 = arith.constant dense<0.000000e+00> : vector<32x128xf32>
    %70 = tpu.matmul %68, %69, %cst_68 {dimension_numbers = #tpu.dot_dimension_numbers<[1], [0], [0], [1], [0, 0, 1, 1], [], []>} : vector<32x64xbf16>, vector<64x128xbf16>, vector<32x128xf32> -> vector<32x128xf32>
    %c0_69 = arith.constant 0 : index
    %c0_70 = arith.constant 0 : index
    %71 = vector.load %arg6[%c0_69, %c0_70] : memref<1x128xf32, #tpu.memory_space<vmem>>, vector<1x128xf32>
    %72 = vector.extract_strided_slice %67 {offsets = [0, 0], sizes = [16, 128], strides = [1, 1]} : vector<34x128xf32> to vector<16x128xf32>
    %73 = vector.extract_strided_slice %70 {offsets = [0, 0], sizes = [16, 128], strides = [1, 1]} : vector<32x128xf32> to vector<16x128xf32>
    %74 = arith.addf %72, %73 : vector<16x128xf32>
    %75 = vector.broadcast %71 : vector<1x128xf32> to vector<16x128xf32>
    %76 = arith.addf %74, %75 : vector<16x128xf32>
    %cst_71 = arith.constant 0.000000e+00 : f32
    %77 = vector.broadcast %cst_71 : f32 to vector<16x128xf32>
    %78 = arith.maximumf %76, %77 : vector<16x128xf32>
    %c0_72 = arith.constant 0 : index
    %c0_73 = arith.constant 0 : index
    %c0_74 = arith.constant 0 : index
    %79 = vector.load %arg7[%c0_72, %c0_73, %c0_74] : memref<2x16x128xf32, #tpu.memory_space<vmem>>, vector<1x16x128xf32>
    %80 = vector.shape_cast %79 : vector<1x16x128xf32> to vector<16x128xf32>
    %81 = vector.shape_cast %78 : vector<16x128xf32> to vector<1x16x128xf32>
    tpu.vector_store %arg7[%c0_72, %c0_73, %c0_74], %81 {strides = array<i32>} : memref<2x16x128xf32, #tpu.memory_space<vmem>>, vector<1x16x128xf32>,
    %82 = vector.extract_strided_slice %67 {offsets = [18, 0], sizes = [16, 128], strides = [1, 1]} : vector<34x128xf32> to vector<16x128xf32>
    %83 = vector.extract_strided_slice %70 {offsets = [16, 0], sizes = [16, 128], strides = [1, 1]} : vector<32x128xf32> to vector<16x128xf32>
    %84 = arith.addf %82, %83 : vector<16x128xf32>
    %85 = vector.broadcast %71 : vector<1x128xf32> to vector<16x128xf32>
    %86 = arith.addf %84, %85 : vector<16x128xf32>
    %cst_75 = arith.constant 0.000000e+00 : f32
    %87 = vector.broadcast %cst_75 : f32 to vector<16x128xf32>
    %88 = arith.maximumf %86, %87 : vector<16x128xf32>
    %c1_76 = arith.constant 1 : index
    %c0_77 = arith.constant 0 : index
    %c0_78 = arith.constant 0 : index
    %89 = vector.load %arg7[%c1_76, %c0_77, %c0_78] : memref<2x16x128xf32, #tpu.memory_space<vmem>>, vector<1x16x128xf32>
    %90 = vector.shape_cast %89 : vector<1x16x128xf32> to vector<16x128xf32>
    %91 = vector.shape_cast %88 : vector<16x128xf32> to vector<1x16x128xf32>
    tpu.vector_store %arg7[%c1_76, %c0_77, %c0_78], %91 {strides = array<i32>} : memref<2x16x128xf32, #tpu.memory_space<vmem>>, vector<1x16x128xf32>,
    return
  }
  func.func @transform_0(%arg0: i32) -> (i32, i32, i32) {
    %c0_i32 = arith.constant 0 : i32
    %c0_i32_0 = arith.constant 0 : i32
    %c0_i32_1 = arith.constant 0 : i32
    return %arg0, %c0_i32, %c0_i32_0 : i32, i32, i32
  }
  func.func @transform_1(%arg0: i32) -> (i32, i32, i32) {
    %c0_i32 = arith.constant 0 : i32
    %c0_i32_0 = arith.constant 0 : i32
    %c0_i32_1 = arith.constant 0 : i32
    %c0_i32_2 = arith.constant 0 : i32
    return %c0_i32, %c0_i32_0, %c0_i32_1 : i32, i32, i32
  }
  func.func @transform_2(%arg0: i32) -> (i32, i32) {
    %c0_i32 = arith.constant 0 : i32
    %c0_i32_0 = arith.constant 0 : i32
    %c0_i32_1 = arith.constant 0 : i32
    return %c0_i32, %c0_i32_0 : i32, i32
  }
  func.func @transform_3(%arg0: i32) -> (i32, i32, i32) {
    %c0_i32 = arith.constant 0 : i32
    %c0_i32_0 = arith.constant 0 : i32
    %c0_i32_1 = arith.constant 0 : i32
    %c0_i32_2 = arith.constant 0 : i32
    return %c0_i32, %c0_i32_0, %c0_i32_1 : i32, i32, i32
  }
  func.func @transform_4(%arg0: i32) -> (i32, i32) {
    %c0_i32 = arith.constant 0 : i32
    %c0_i32_0 = arith.constant 0 : i32
    %c0_i32_1 = arith.constant 0 : i32
    return %c0_i32, %c0_i32_0 : i32, i32
  }
  func.func @transform_5(%arg0: i32) -> (i32, i32) {
    %c0_i32 = arith.constant 0 : i32
    %c0_i32_0 = arith.constant 0 : i32
    %c0_i32_1 = arith.constant 0 : i32
    return %c0_i32, %c0_i32_0 : i32, i32
  }
  func.func @transform_6(%arg0: i32) -> (i32, i32, i32) {
    %c0_i32 = arith.constant 0 : i32
    %c0_i32_0 = arith.constant 0 : i32
    %c0_i32_1 = arith.constant 0 : i32
    return %arg0, %c0_i32, %c0_i32_0 : i32, i32, i32
  }
}

</mosaic_0001>

<bundles_post_ra>
// kernel: tpu_custom_call.1
= control target key start
LH: loop header
LB: loop body
LE: loop exit
PB: predicated region body
PF: predicated region fallthrough
CT: control target
= control target key end

     0   :  { %11 = vsyncpa [#allocation5], 0  ;;  %s1212_s0 = inlined_call_operand.hbm [shape: bf16[2,16,64], index: 0, kind: input, shape index: {}]   ;;  %s1213_s1 = inlined_call_operand.hbm [shape: bf16[3,64,128], index: 1, kind: input, shape index: {}]   ;;  %s1214_s2 = inlined_call_operand.vmem [shape: f32[1,128], index: 2, kind: input, shape index: {}]   ;;  %s1215_s3 = inlined_call_operand.hbm [shape: bf16[3,128,128], index: 3, kind: input, shape index: {}]   ;;  %s1216_s4 = inlined_call_operand.hbm [shape: bf16[64,128], index: 4, kind: input, shape index: {}]   ;;  %s1217_s5 = inlined_call_operand.vmem [shape: f32[1,128], index: 5, kind: input, shape index: {}]   ;;  %s1218_s6 = inlined_call_operand.hbm [shape: f32[2,16,128], index: 6, kind: output, shape index: {}]  }
   0x1   :  { %12 = vsyncpa [#allocation8], 0 }
   0x2   :  { %13 = vsyncpa [#allocation11], 0 }
   0x3   :  { %14 = vsyncpa [#allocation6], 0  ;;  %s32_s23 = sshll.u32 %s1213_s1, 4  ;;  %s1131_s24 = smov [#allocation7]   ;;  %s33_s23 = int_to_ptr.hbm [resolvable:$true] %s32_s23 }
   0x4   :  { %s34_s25 = sshll.u32 %s1131_s24, 4  ;;  %s19_s28 = sshll.u32 %s1212_s0, 4  ;;  %s35_s25 = int_to_ptr.vmem [resolvable:$true] %s34_s25  ;;  %s20_s28 = int_to_ptr.hbm [resolvable:$true] %s19_s28 }
   0x5   :  { %s1132_s29 = smov 64   ;;  %s1133_s30 = smov 4  }
   0x6   :  { %40 = dma.hbm_to_vmem [thread:$0]  %s33_s23, 1536, %s35_s25, [#allocation8], %s1132_s29, %s1132_s29, %s1133_s30  }
   0x7   :  { %s1134_s7 = smov [#allocation4]   ;;  %s47_s11 = sshll.u32 %s1215_s3, 4  ;;  %s48_s11 = int_to_ptr.hbm [resolvable:$true] %s47_s11 }
   0x8   :  { %s21_s8 = sshll.u32 %s1134_s7, 4  ;;  %s60_s13 = sshll.u32 %s1216_s4, 4  ;;  %s22_s8 = int_to_ptr.vmem [resolvable:$true] %s21_s8  ;;  %s61_s13 = int_to_ptr.hbm [resolvable:$true] %s60_s13 }
   0x9   :  { %27 = dma.hbm_to_vmem [thread:$0]  %s20_s28, 256, %s22_s8, [#allocation5], %s1132_s29, %s1132_s29, %s1133_s30  }
   0xa   :  { %s1135_s14 = smov [#allocation9]   ;;  %s1136_s0 = smov [#allocation10]  }
   0xb   :  { %s49_s15 = sshll.u32 %s1135_s14, 4  ;;  %s62_s16 = sshll.u32 %s1136_s0, 4  ;;  %s50_s15 = int_to_ptr.vmem [resolvable:$true] %s49_s15  ;;  %s63_s16 = int_to_ptr.vmem [resolvable:$true] %s62_s16 }
   0xc   :  { %55 = dma.hbm_to_vmem [thread:$0]  %s48_s11, 3072, %s50_s15, [#allocation8], %s1132_s29, %s1132_s29, %s1133_s30  }
   0xd   :  { %68 = dma.hbm_to_vmem [thread:$0]  %s61_s13, 512, %s63_s16, [#allocation11], %s1132_s29, %s1132_s29, %s1133_s30  }
   0xe   :  { %1123 = dma.done.wait [#allocation5], 256  }
   0xf   :  { %1124 = vsyncadd [#allocation5], 4294967040 }
  0x10   :  { %1125 = dma.done.wait [#allocation8], 4608  }
  0x11   :  { %1126 = vsyncadd [#allocation8], 4294962688 }
  0x12   :  { %1127 = dma.done.wait [#allocation11], 512  }
  0x13   :  { %1128 = vsyncadd [#allocation11], 4294966784  ;;  %vm92_vm0 = vcmask 516096   ;;  %v1137_v0 = vmov 0.0   ;;  %v954_v1 = vld [vmem:[#allocation7 + $0x38] sm:$0xff]  ;;  %v953_v4 = vld [vmem:[#allocation7 + $0x30] sm:$0xff] }
  0x14   :  { %93 = vst.msk [vmem:[#allocation2] sm:$0x1] %vm92_vm0, %v1137_v0  ;;  %v950_v2 = vld [vmem:[#allocation7 + $0x18] sm:$0xff]  ;;  %176 = vmatpush.bf16.msra.mxu0 %v954_v1  ;;  %v949_v5 = vld [vmem:[#allocation7 + $0x10] sm:$0xff]  ;;  %987 = vmatpush.bf16.msra.mxu3 %v954_v1  ;;  %vm97_vm1 = vcmask 523264   ;;  %v952_v12 = vld [vmem:[#allocation7 + $0x28] sm:$0xff] }
  0x15   :  { %94 = vst.msk [vmem:[#allocation2 + $0x11] sm:$0x1] %vm92_vm0, %v1137_v0  ;;  %v958_v3 = vld [vmem:[#allocation7 + $0x58] sm:$0xff]  ;;  %232 = vmatpush.bf16.msra.mxu1 %v950_v2  ;;  %v957_v6 = vld [vmem:[#allocation7 + $0x50] sm:$0xff]  ;;  %v948_v13 = vld [vmem:[#allocation7 + $0x8] sm:$0xff]  ;;  %vm725_vm2 = vcmask 1041408  }
  0x16   :  { %100 = vst.msk [vmem:[#allocation2 + $0x12] sm:$0x1] %vm92_vm0, %v1137_v0  ;;  %305 = vmatpush.bf16.msra.mxu2 %v958_v3  ;;  %v88_v7 = vld [vmem:[#allocation4] sm:$0xff]   ;;  %v90_v8 = vld [vmem:[#allocation4 + $0x8] sm:$0xff]   ;;  %v956_v15 = vld [vmem:[#allocation7 + $0x48] sm:$0xff]  ;;  %s751_s21 = sshll.u32 %s1218_s6, 4  ;;  %s752_s21 = int_to_ptr.hbm [resolvable:$true] %s751_s21 }
  0x17   :  { %101 = vst.msk [vmem:[#allocation2 + $0x23] sm:$0x1] %vm92_vm0, %v1137_v0  ;;  %v95_v9 = vunpack.c.l.bf16 %v88_v7  ;;  %v96_v10 = vunpack.c.h.bf16 %v88_v7  ;;  %v102_v11 = vunpack.c.l.bf16 %v90_v8  ;;  %v103_v14 = vunpack.c.h.bf16 %v90_v8  ;;  %v951_v16 = vld [vmem:[#allocation7 + $0x20] sm:$0xff]  ;;  %v982_v30 = vld [vmem:[#allocation9 + $0xb8] sm:$0xff]  ;;  %v981_v32 = vld [vmem:[#allocation9 + $0xb0] sm:$0xff]  ;;  %s1139_s22 = smov 128  }
  0x18   :  { %343 = vst [vmem:[#allocation3] sm:$0x1] %v1137_v0  ;;  %177 = vmatpush.bf16.msra.mxu0 %v953_v4  ;;  %988 = vmatpush.bf16.msra.mxu3 %v953_v4  ;;  %v947_v17 = vld [vmem:[#allocation7] sm:$0xff]  ;;  %v986_v31 = vld [vmem:[#allocation10 + $0x18] sm:$0xff]  ;;  %v973_v47 = vld [vmem:[#allocation9 + $0x70] sm:$0xff]  ;;  %s1140_s23 = smov 8  }
  0x19   :  { %344 = vst [vmem:[#allocation3 + $0x11] sm:$0x1] %v1137_v0  ;;  %233 = vmatpush.bf16.msra.mxu1 %v949_v5  ;;  %v955_v18 = vld [vmem:[#allocation7 + $0x40] sm:$0xff]  ;;  %v974_v46 = vld [vmem:[#allocation9 + $0x78] sm:$0xff]  ;;  %v972_v49 = vld [vmem:[#allocation9 + $0x68] sm:$0xff] }
  0x1a   :  { %347 = vst [vmem:[#allocation3 + $0x12] sm:$0x1] %v1137_v0  ;;  %306 = vmatpush.bf16.msra.mxu2 %v957_v6  ;;  %v966_v48 = vld [vmem:[#allocation9 + $0x38] sm:$0xff]  ;;  %v980_v50 = vld [vmem:[#allocation9 + $0xa8] sm:$0xff]  ;;  %v965_v51 = vld [vmem:[#allocation9 + $0x30] sm:$0xff] }
  0x1b   :  { %348 = vst [vmem:[#allocation3 + $0x23] sm:$0x1] %v1137_v0  ;;  %v985_v52 = vld [vmem:[#allocation10 + $0x10] sm:$0xff]  ;;  %v971_v53 = vld [vmem:[#allocation9 + $0x60] sm:$0xff]  ;;  %v964_v54 = vld [vmem:[#allocation9 + $0x28] sm:$0xff] }
  0x1c   :  { %98 = vst.msk [vmem:[#allocation2 + $0x1] sm:$0xff] %vm97_vm1, %v95_v9  ;;  %178 = vmatpush.bf16.msra.mxu0 %v952_v12  ;;  %989 = vmatpush.bf16.msra.mxu3 %v952_v12  ;;  %v970_v55 = vld [vmem:[#allocation9 + $0x58] sm:$0xff]  ;;  %v979_v56 = vld [vmem:[#allocation9 + $0xa0] sm:$0xff]  ;;  %v969_v58 = vld [vmem:[#allocation9 + $0x50] sm:$0xff] }
  0x1d   :  { %99 = vst.msk [vmem:[#allocation2 + $0x9] sm:$0xff] %vm97_vm1, %v96_v10  ;;  %234 = vmatpush.bf16.msra.mxu1 %v948_v13  ;;  %v963_v57 = vld [vmem:[#allocation9 + $0x20] sm:$0xff]  ;;  %v978_v59 = vld [vmem:[#allocation9 + $0x98] sm:$0xff]  ;;  %v968_v61 = vld [vmem:[#allocation9 + $0x48] sm:$0xff] }
  0x1e   :  { %104 = vst.msk [vmem:[#allocation2 + $0x13] sm:$0xff] %vm97_vm1, %v102_v11  ;;  %307 = vmatpush.bf16.msra.mxu2 %v956_v15  ;;  %v962_v60 = vld [vmem:[#allocation9 + $0x18] sm:$0xff]  ;;  %v961_v62 = vld [vmem:[#allocation9 + $0x10] sm:$0xff]  ;;  %v967_v0 = vld [vmem:[#allocation9 + $0x40] sm:$0xff] }
  0x1f   :  { %105 = vst.msk [vmem:[#allocation2 + $0x1b] sm:$0xff] %vm97_vm1, %v103_v14  ;;  %v977_v63 = vld [vmem:[#allocation9 + $0x90] sm:$0xff]  ;;  %v984_v1 = vld [vmem:[#allocation10 + $0x8] sm:$0xff]  ;;  %v983_v4 = vld [vmem:[#allocation10] sm:$0xff] }
  0x20   :  { %179 = vmatpush.bf16.msra.mxu0 %v951_v16  ;;  %990 = vmatpush.bf16.msra.mxu3 %v951_v16  ;;  %v960_v2 = vld [vmem:[#allocation9 + $0x8] sm:$0xff]  ;;  %v959_v5 = vld [vmem:[#allocation9] sm:$0xff]  ;;  %v945_v7 = vld [vmem:[#allocation4] sm:$0xff] }
  0x21   :  { %235 = vmatpush.bf16.msra.mxu1 %v947_v17  ;;  %v976_v3 = vld [vmem:[#allocation9 + $0x88] sm:$0xff]  ;;  %v975_v6 = vld [vmem:[#allocation9 + $0x80] sm:$0xff] }
  0x22   :  { %308 = vmatpush.bf16.msra.mxu2 %v955_v18  ;;  %v1001_v11 = vld [vmem:[%s1214_s2] ss:$0 sm:$0xff] }
  0x23   :  { %v122_v19 = vld [vmem:[#allocation2 + $0x1] sm:$0xff] }
  0x24   :  { %v106_v20 = vld [vmem:[#allocation2] sm:$0xff]  ;;  %v123_v21 = vld [vmem:[#allocation2 + $0x9] sm:$0xff]  ;;  %449 = vmatpush.bf16.msrb.mxu3 %v974_v46  ;;  %520 = vmatpush.bf16.msrb.mxu0 %v966_v48 }
  0x25   :  { %v107_v22 = vld [vmem:[#allocation2 + $0x8] sm:$0xff]  ;;  %v127_v24 = vpack.c.bf16 %v123_v21, %v122_v19  ;;  %616 = vmatpush.bf16.msrb.mxu1 %v982_v30  ;;  %v124_v33 = vld [vmem:[#allocation2 + $0x11] sm:$0xff] }
  0x26   :  { %v251_v23 = vld [vmem:[#allocation2 + $0x2] sm:$0xff]  ;;  %v111_v25 = vpack.c.bf16 %v107_v22, %v106_v20  ;;  %v252_v26 = vld [vmem:[#allocation2 + $0xa] sm:$0xff]  ;;  %696 = vmatpush.bf16.msrb.mxu2 %v986_v31  ;;  %v125_v34 = vld [vmem:[#allocation2 + $0x19] sm:$0xff] }
  0x27   :  { %v256_v27 = vpack.c.bf16 %v252_v26, %v251_v23  ;;  %782 = vmatmul.msk.bf16.vlgmr.msra.gmra.mxu0 %vm97_vm1, %v127_v24  ;;  %v126_v28 = vld [vmem:[#allocation2 + $0x21] sm:$0x3]  ;;  %v108_v35 = vld [vmem:[#allocation2 + $0x10] sm:$0xff]  ;;  %v109_v36 = vld [vmem:[#allocation2 + $0x18] sm:$0xff]  ;;  %v128_v39 = vpack.c.bf16 %v125_v34, %v124_v33 }
  0x28   :  { %801 = vmatmul.msk.bf16.vlgmr.msra.gmra.mxu1 %vm97_vm1, %v111_v25  ;;  %v129_v29 = vpack.c.bf16 %v126_v28, %v126_v28  ;;  %v253_v37 = vld [vmem:[#allocation2 + $0x12] sm:$0xff]  ;;  %v254_v38 = vld [vmem:[#allocation2 + $0x1a] sm:$0xff]  ;;  %v112_v40 = vpack.c.bf16 %v109_v36, %v108_v35  ;;  %v255_v43 = vld [vmem:[#allocation2 + $0x22] sm:$0x3]  ;;  %450 = vmatpush.bf16.msrb.mxu3 %v973_v47 }
  0x29   :  { %820 = vmatmul.msk.bf16.vlgmr.msra.gmra.mxu2 %vm97_vm1, %v256_v27  ;;  %617 = vmatpush.bf16.msrb.mxu1 %v981_v32  ;;  %v257_v41 = vpack.c.bf16 %v254_v38, %v253_v37  ;;  %v110_v42 = vld [vmem:[#allocation2 + $0x20] sm:$0x3]  ;;  %v258_v45 = vpack.c.bf16 %v255_v43, %v255_v43  ;;  %v946_v21 = vld [vmem:[#allocation4 + $0x8] sm:$0xff] }
  0x2a   :  { %784 = vmatmul.msk.bf16.vlgmr.msra.gmra.mxu3 %vm97_vm1, %v129_v29  ;;  %v113_v44 = vpack.c.bf16 %v110_v42, %v110_v42  ;;  %697 = vmatpush.bf16.msrb.mxu2 %v985_v52 }
  0x2b   :  { %521 = vmatpush.bf16.msrb.mxu0 %v965_v51 }
  0x2c   :  { %451 = vmatpush.bf16.msrb.mxu3 %v972_v49 }
  0x2d   :  { %618 = vmatpush.bf16.msrb.mxu1 %v980_v50 }
  0x2e   :  { %698 = vmatpush.bf16.msrb.mxu2 %v984_v1 }
  0x2f   :  { %522 = vmatpush.bf16.msrb.mxu0 %v964_v54 }
  0x30   :  { %452 = vmatpush.bf16.msrb.mxu3 %v971_v53 }
  0x31   :  { %619 = vmatpush.bf16.msrb.mxu1 %v979_v56 }
  0x32   :  { %699 = vmatpush.bf16.msrb.mxu2 %v983_v4 }
  0x33   :  { %523 = vmatpush.bf16.msrb.mxu0 %v963_v57 }
  0x34   :  { %453 = vmatpush.bf16.msrb.mxu3 %v970_v55 }
  0x35   :  { %620 = vmatpush.bf16.msrb.mxu1 %v978_v59 }
  0x37   :  { %783 = vmatmul.msk.bf16.gmra.mxu0 %vm97_vm1, %v128_v39 }
  0x38   :  { %802 = vmatmul.msk.bf16.gmra.mxu1 %vm97_vm1, %v112_v40  ;;  %454 = vmatpush.bf16.msrb.mxu3 %v969_v58 }
  0x39   :  { %821 = vmatmul.msk.bf16.gmra.mxu2 %vm97_vm1, %v257_v41  ;;  %524 = vmatpush.bf16.msrb.mxu0 %v962_v60 }
  0x3a   :  { %621 = vmatpush.bf16.msrb.mxu1 %v977_v63 }
  0x3c   :  { %455 = vmatpush.bf16.msrb.mxu3 %v968_v61 }
  0x3d   :  { %525 = vmatpush.bf16.msrb.mxu0 %v961_v62 }
  0x3e   :  { %622 = vmatpush.bf16.msrb.mxu1 %v976_v3 }
  0x40   :  { %456 = vmatpush.bf16.msrb.mxu3 %v967_v0 }
  0x41   :  { %526 = vmatpush.bf16.msrb.mxu0 %v960_v2 }
  0x42   :  { %623 = vmatpush.bf16.msrb.mxu1 %v975_v6 }
  0x45   :  { %527 = vmatpush.bf16.msrb.mxu0 %v959_v5 }
  0x48   :  { %803 = vmatmul.msk.bf16.gmra.mxu1 %vm97_vm1, %v113_v44 }
  0x49   :  { %822 = vmatmul.msk.bf16.gmra.mxu2 %vm97_vm1, %v258_v45 }
  0x59   :  { %943 = vmatmul.msk.bf16.vlgmr.msrb.gmra.mxu2 %vm97_vm1, %v945_v7 }
  0x69   :  { %944 = vmatmul.msk.bf16.gmra.mxu2 %vm97_vm1, %v946_v21 }
  0xa4   :  { %v181_v8 = vpop.f32.mrf.mxu0 }
  0xa5   :  { %v237_v9 = vpop.f32.mrf.mxu1 }
  0xa6   :  { %v238_v10 = vadd.f32 %v237_v9, %v181_v8 }
  0xac   :  { %v310_v12 = vpop.f32.mrf.mxu2  ;;  %v183_v14 = vpop.f32.mrf.mxu0 }
  0xad   :  { %v324_v13 = vadd.f32 %v310_v12, %v238_v10  ;;  %v239_v15 = vpop.f32.mrf.mxu1  ;;  %v191_v16 = vpop.f32.mrf.mxu3 }
  0xae   :  { %v240_v19 = vadd.f32 %v239_v15, %v183_v14 }
  0xaf   :  { %v333_v17 = vadd.f32 %v1001_v11, %v324_v13 }
  0xb1   :  { %v338_v18 = vmax.f32 %v333_v17, 0.0 }
  0xb3   :  { %345 = vst [vmem:[#allocation3 + $0x1] sm:$0xff] %v338_v18 }
  0xb4   :  { %v312_v20 = vpop.f32.mrf.mxu2  ;;  %v186_v24 = vpop.f32.mrf.mxu0 }
  0xb5   :  { %v325_v22 = vadd.f32 %v312_v20, %v240_v19  ;;  %v242_v23 = vpop.f32.mrf.mxu1  ;;  %v193_v25 = vpop.f32.mrf.mxu3 }
  0xb6   :  { %v243_v28 = vadd.f32 %v242_v23, %v186_v24 }
  0xb7   :  { %v334_v26 = vadd.f32 %v1001_v11, %v325_v22 }
  0xb9   :  { %v339_v27 = vmax.f32 %v334_v26, 0.0 }
  0xba   :  { %v352_v36 = vld [vmem:[#allocation3] sm:$0xff] }
  0xbb   :  { %346 = vst [vmem:[#allocation3 + $0x9] sm:$0xff] %v339_v27  ;;  %v381_v29 = vpack.c.bf16 %v339_v27, %v338_v18 }
  0xbc   :  { %v315_v30 = vpop.f32.mrf.mxu2  ;;  %v188_v34 = vpop.f32.mrf.mxu0 }
  0xbd   :  { %v326_v31 = vadd.f32 %v315_v30, %v243_v28  ;;  %v244_v32 = vpop.f32.mrf.mxu1  ;;  %457 = vmatmul.bf16.vlgmr.msrb.gmra.mxu3 %v381_v29 }
  0xbe   :  { %v245_v40 = vadd.f32 %v244_v32, %v188_v34 }
  0xbf   :  { %v335_v33 = vadd.f32 %v1001_v11, %v326_v31 }
  0xc1   :  { %v340_v35 = vmax.f32 %v335_v33, 0.0 }
  0xc2   :  { %v353_v37 = vld [vmem:[#allocation3 + $0x8] sm:$0xff] }
  0xc3   :  { %v543_v38 = vld [vmem:[#allocation3 + $0x2] sm:$0xff]  ;;  %v544_v39 = vld [vmem:[#allocation3 + $0xa] sm:$0xff]  ;;  %349 = vst [vmem:[#allocation3 + $0x11] sm:$0xfc] %v340_v35  ;;  %v357_v41 = vpack.c.bf16 %v353_v37, %v352_v36 }
  0xc4   :  { %v548_v42 = vpack.c.bf16 %v544_v39, %v543_v38  ;;  %v317_v43 = vpop.f32.mrf.mxu2 }
  0xc5   :  { %v327_v44 = vadd.f32 %v317_v43, %v245_v40  ;;  %528 = vmatmul.bf16.vlgmr.msrb.gmra.mxu0 %v357_v41  ;;  %v247_v45 = vpop.f32.mrf.mxu1 }
  0xc6   :  { %624 = vmatmul.bf16.vlgmr.msrb.gmra.mxu1 %v548_v42  ;;  %v248_v48 = vadd.f32 %v247_v45, %v191_v16 }
  0xc7   :  { %v336_v46 = vadd.f32 %v1001_v11, %v327_v44 }
  0xc9   :  { %v341_v47 = vmax.f32 %v336_v46, 0.0 }
  0xca   :  { %v378_v49 = vld [vmem:[#allocation3 + $0x11] sm:$0xff] }
  0xcb   :  { %350 = vst [vmem:[#allocation3 + $0x19] sm:$0xff] %v341_v47  ;;  %v382_v50 = vpack.c.bf16 %v341_v47, %v378_v49  ;;  %v354_v56 = vld [vmem:[#allocation3 + $0x10] sm:$0xff] }
  0xcc   :  { %v320_v51 = vpop.f32.mrf.mxu2 }
  0xcd   :  { %v328_v52 = vadd.f32 %v320_v51, %v248_v48  ;;  %v249_v53 = vpop.f32.mrf.mxu1  ;;  %462 = vmatmul.bf16.gmra.mxu3 %v382_v50 }
  0xcf   :  { %v337_v54 = vadd.f32 %v1001_v11, %v328_v52  ;;  %v1002_v11 = vld [vmem:[%s1217_s5] ss:$0 sm:$0xff]  ;;  %s1138_s5 = smov [#allocation12]  }
  0xd0   :  { %s749_s18 = sshll.u32 %s1138_s5, 4  ;;  %s750_s18 = int_to_ptr.vmem [resolvable:$true] %s749_s18 }
  0xd1   :  { %v342_v55 = vmax.f32 %v337_v54, 0.0 }
  0xd2   :  { %v355_v57 = vld [vmem:[#allocation3 + $0x18] sm:$0xff] }
  0xd3   :  { %351 = vst [vmem:[#allocation3 + $0x21] sm:$0x3] %v342_v55  ;;  %v358_v58 = vpack.c.bf16 %v355_v57, %v354_v56  ;;  %v545_v60 = vld [vmem:[#allocation3 + $0x12] sm:$0xff] }
  0xd4   :  { %v322_v59 = vpop.f32.mrf.mxu2 }
  0xd5   :  { %533 = vmatmul.bf16.gmra.mxu0 %v358_v58 }
  0xda   :  { %v546_v61 = vld [vmem:[#allocation3 + $0x1a] sm:$0xff]  ;;  %v547_v3 = vld [vmem:[#allocation3 + $0x22] sm:$0x3] }
  0xdb   :  { %v380_v62 = vld [vmem:[#allocation3 + $0x21] sm:$0x3]  ;;  %v549_v63 = vpack.c.bf16 %v546_v61, %v545_v60  ;;  %v550_v4 = vpack.c.bf16 %v547_v3, %v547_v3 }
  0xdc   :  { %v383_v0 = vpack.c.bf16 %v380_v62, %v380_v62  ;;  %v356_v1 = vld [vmem:[#allocation3 + $0x20] sm:$0x3]  ;;  %v701_v5 = vpop.f32.mrf.mxu2 }
  0xdd   :  { %629 = vmatmul.bf16.gmra.mxu1 %v549_v63  ;;  %v359_v2 = vpack.c.bf16 %v356_v1, %v356_v1 }
  0xde   :  { %467 = vmatmul.bf16.gmra.mxu3 %v383_v0 }
  0xe4   :  { %v703_v15 = vpop.f32.mrf.mxu2 }
  0xe5   :  { %538 = vmatmul.bf16.gmra.mxu0 %v359_v2 }
  0xec   :  { %v706_v24 = vpop.f32.mrf.mxu2 }
  0xed   :  { %634 = vmatmul.bf16.gmra.mxu1 %v550_v4  ;;  %v726_v29 = vrot.slane %v706_v24, 6 }
  0xf4   :  { %v708_v33 = vpop.f32.mrf.mxu2 }
  0xf5   :  { %v727_v35 = vrot.slane %v708_v33, 6 }
  0xf7   :  { %v728_v42 = vsel %vm725_vm2, %v726_v29, %v727_v35 }
 0x140   :  { %v458_v6 = vpop.f32.mrf.mxu3 }
 0x142   :  { %v529_v7 = vpop.f32.mrf.mxu0 }
 0x143   :  { %v625_v8 = vpop.f32.mrf.mxu1  ;;  %v530_v9 = vadd.f32 %v529_v7, %v458_v6 }
 0x145   :  { %v639_v10 = vadd.f32 %v625_v8, %v530_v9 }
 0x147   :  { %v712_v12 = vadd.f32 %v701_v5, %v639_v10 }
 0x148   :  { %v460_v13 = vpop.f32.mrf.mxu3 }
 0x149   :  { %v717_v14 = vadd.f32 %v1002_v11, %v712_v12 }
 0x14a   :  { %v531_v16 = vpop.f32.mrf.mxu0 }
 0x14b   :  { %v719_v17 = vmax.f32 %v717_v14, 0.0  ;;  %v532_v18 = vadd.f32 %v531_v16, %v460_v13  ;;  %v627_v19 = vpop.f32.mrf.mxu1 }
 0x14d   :  { %721 = vst [vmem:[#allocation12] sm:$0xff] %v719_v17  ;;  %v640_v20 = vadd.f32 %v627_v19, %v532_v18 }
 0x14f   :  { %v713_v21 = vadd.f32 %v703_v15, %v640_v20 }
 0x150   :  { %v463_v22 = vpop.f32.mrf.mxu3 }
 0x151   :  { %v718_v23 = vadd.f32 %v1002_v11, %v713_v21 }
 0x152   :  { %v534_v25 = vpop.f32.mrf.mxu0 }
 0x153   :  { %v720_v26 = vmax.f32 %v718_v23, 0.0  ;;  %v535_v28 = vadd.f32 %v534_v25, %v463_v22 }
 0x155   :  { %722 = vst [vmem:[#allocation12 + $0x8] sm:$0xff] %v720_v26 }
 0x158   :  { %v465_v27 = vpop.f32.mrf.mxu3 }
 0x15a   :  { %v536_v30 = vpop.f32.mrf.mxu0  ;;  %v630_v31 = vpop.f32.mrf.mxu1 }
 0x15b   :  { %v641_v32 = vadd.f32 %v630_v31, %v535_v28  ;;  %v537_v39 = vadd.f32 %v536_v30, %v465_v27 }
 0x15d   :  { %v732_v34 = vadd.f32 %v726_v29, %v641_v32 }
 0x15f   :  { %v735_v36 = vadd.f32 %v1002_v11, %v732_v34 }
 0x161   :  { %v468_v37 = vpop.f32.mrf.mxu3  ;;  %v738_v38 = vmax.f32 %v735_v36, 0.0 }
 0x162   :  { %v539_v40 = vpop.f32.mrf.mxu0  ;;  %v632_v41 = vpop.f32.mrf.mxu1 }
 0x163   :  { %742 = vst [vmem:[#allocation12 + $0xe] sm:$0xfc] %v738_v38  ;;  %v642_v43 = vadd.f32 %v632_v41, %v537_v39  ;;  %v540_v48 = vadd.f32 %v539_v40, %v468_v37 }
 0x165   :  { %v733_v44 = vadd.f32 %v728_v42, %v642_v43 }
 0x167   :  { %v736_v45 = vadd.f32 %v1002_v11, %v733_v44 }
 0x169   :  { %v470_v46 = vpop.f32.mrf.mxu3  ;;  %v739_v47 = vmax.f32 %v736_v45, 0.0 }
 0x16a   :  { %v541_v49 = vpop.f32.mrf.mxu0  ;;  %v635_v50 = vpop.f32.mrf.mxu1 }
 0x16b   :  { %743 = vst [vmem:[#allocation12 + $0x16] sm:$0xff] %v739_v47  ;;  %v643_v51 = vadd.f32 %v635_v50, %v540_v48 }
 0x16d   :  { %v734_v52 = vadd.f32 %v727_v35, %v643_v51 }
 0x16f   :  { %v737_v53 = vadd.f32 %v1002_v11, %v734_v52 }
 0x171   :  { %v740_v54 = vmax.f32 %v737_v53, 0.0 }
 0x172   :  { %v637_v55 = vpop.f32.mrf.mxu1 }
 0x173   :  { %744 = vst [vmem:[#allocation12 + $0x1e] sm:$0x3] %v740_v54 }
 0x174   :  { %757 = dma.vmem_to_hbm [thread:$0]  %s750_s18, 512, %s752_s21, [#allocation6], %s1139_s22, %s1139_s22, %s1140_s23  }
 0x175   :  { %1129 = dma.done.wait [#allocation6], 512  }
 0x176   :  { %1130 = vsyncadd [#allocation6], 4294966784 }
 0x177   :  { %762 = vsyncpa [#allocation5], 1 }
 0x178   :  { %763 = vsyncpa [#allocation8], 1 }
 0x179   :  { %764 = vsyncpa [#allocation11], 1 }
 0x17a   :  { %765 = vsyncpa [#allocation6], 1 }

// kernel: tpu_custom_call.1
= control target key start
LH: loop header
LB: loop body
LE: loop exit
PB: predicated region body
PF: predicated region fallthrough
CT: control target
= control target key end

     0   :  { %11 = vsyncpa [#allocation5], 0  ;;  %s1212_s0 = inlined_call_operand.hbm [shape: bf16[2,16,64], index: 0, kind: input, shape index: {}]   ;;  %s1213_s1 = inlined_call_operand.hbm [shape: bf16[3,64,128], index: 1, kind: input, shape index: {}]   ;;  %s1214_s2 = inlined_call_operand.vmem [shape: f32[1,128], index: 2, kind: input, shape index: {}]   ;;  %s1215_s3 = inlined_call_operand.hbm [shape: bf16[3,128,128], index: 3, kind: input, shape index: {}]   ;;  %s1216_s4 = inlined_call_operand.hbm [shape: bf16[64,128], index: 4, kind: input, shape index: {}]   ;;  %s1217_s5 = inlined_call_operand.vmem [shape: f32[1,128], index: 5, kind: input, shape index: {}]   ;;  %s1218_s6 = inlined_call_operand.hbm [shape: f32[2,16,128], index: 6, kind: output, shape index: {}]  }
   0x1   :  { %12 = vsyncpa [#allocation8], 0 }
   0x2   :  { %13 = vsyncpa [#allocation11], 0 }
   0x3   :  { %14 = vsyncpa [#allocation6], 0  ;;  %s32_s23 = sshll.u32 %s1213_s1, 4  ;;  %s1131_s24 = smov [#allocation7]   ;;  %s33_s23 = int_to_ptr.hbm [resolvable:$true] %s32_s23 }
   0x4   :  { %s34_s25 = sshll.u32 %s1131_s24, 4  ;;  %s19_s28 = sshll.u32 %s1212_s0, 4  ;;  %s35_s25 = int_to_ptr.vmem [resolvable:$true] %s34_s25  ;;  %s20_s28 = int_to_ptr.hbm [resolvable:$true] %s19_s28 }
   0x5   :  { %s1132_s29 = smov 64   ;;  %s1133_s30 = smov 4  }
   0x6   :  { %40 = dma.hbm_to_vmem [thread:$0]  %s33_s23, 1536, %s35_s25, [#allocation8], %s1132_s29, %s1132_s29, %s1133_s30  }
   0x7   :  { %s1134_s7 = smov [#allocation4]   ;;  %s47_s11 = sshll.u32 %s1215_s3, 4  ;;  %s48_s11 = int_to_ptr.hbm [resolvable:$true] %s47_s11 }
   0x8   :  { %s21_s8 = sshll.u32 %s1134_s7, 4  ;;  %s60_s13 = sshll.u32 %s1216_s4, 4  ;;  %s22_s8 = int_to_ptr.vmem [resolvable:$true] %s21_s8  ;;  %s61_s13 = int_to_ptr.hbm [resolvable:$true] %s60_s13 }
   0x9   :  { %27 = dma.hbm_to_vmem [thread:$0]  %s20_s28, 256, %s22_s8, [#allocation5], %s1132_s29, %s1132_s29, %s1133_s30  }
   0xa   :  { %s1135_s14 = smov [#allocation9]   ;;  %s1136_s0 = smov [#allocation10]  }
   0xb   :  { %s49_s15 = sshll.u32 %s1135_s14, 4  ;;  %s62_s16 = sshll.u32 %s1136_s0, 4  ;;  %s50_s15 = int_to_ptr.vmem [resolvable:$true] %s49_s15  ;;  %s63_s16 = int_to_ptr.vmem [resolvable:$true] %s62_s16 }
   0xc   :  { %55 = dma.hbm_to_vmem [thread:$0]  %s48_s11, 3072, %s50_s15, [#allocation8], %s1132_s29, %s1132_s29, %s1133_s30  }
   0xd   :  { %68 = dma.hbm_to_vmem [thread:$0]  %s61_s13, 512, %s63_s16, [#allocation11], %s1132_s29, %s1132_s29, %s1133_s30  }
   0xe   :  { %1123 = dma.done.wait [#allocation5], 256  }
   0xf   :  { %1124 = vsyncadd [#allocation5], 4294967040 }
  0x10   :  { %1125 = dma.done.wait [#allocation8], 4608  }
  0x11   :  { %1126 = vsyncadd [#allocation8], 4294962688 }
  0x12   :  { %1127 = dma.done.wait [#allocation11], 512  }
  0x13   :  { %1128 = vsyncadd [#allocation11], 4294966784  ;;  %vm92_vm0 = vcmask 516096   ;;  %v1137_v0 = vmov 0.0   ;;  %v954_v1 = vld [vmem:[#allocation7 + $0x38] sm:$0xff]  ;;  %v953_v4 = vld [vmem:[#allocation7 + $0x30] sm:$0xff] }
  0x14   :  { %93 = vst.msk [vmem:[#allocation2] sm:$0x1] %vm92_vm0, %v1137_v0  ;;  %v950_v2 = vld [vmem:[#allocation7 + $0x18] sm:$0xff]  ;;  %176 = vmatpush.bf16.msra.mxu0 %v954_v1  ;;  %v949_v5 = vld [vmem:[#allocation7 + $0x10] sm:$0xff]  ;;  %987 = vmatpush.bf16.msra.mxu3 %v954_v1  ;;  %vm97_vm1 = vcmask 523264   ;;  %v952_v12 = vld [vmem:[#allocation7 + $0x28] sm:$0xff] }
  0x15   :  { %94 = vst.msk [vmem:[#allocation2 + $0x11] sm:$0x1] %vm92_vm0, %v1137_v0  ;;  %v958_v3 = vld [vmem:[#allocation7 + $0x58] sm:$0xff]  ;;  %232 = vmatpush.bf16.msra.mxu1 %v950_v2  ;;  %v957_v6 = vld [vmem:[#allocation7 + $0x50] sm:$0xff]  ;;  %v948_v13 = vld [vmem:[#allocation7 + $0x8] sm:$0xff]  ;;  %vm725_vm2 = vcmask 1041408  }
  0x16   :  { %100 = vst.msk [vmem:[#allocation2 + $0x12] sm:$0x1] %vm92_vm0, %v1137_v0  ;;  %305 = vmatpush.bf16.msra.mxu2 %v958_v3  ;;  %v88_v7 = vld [vmem:[#allocation4] sm:$0xff]   ;;  %v90_v8 = vld [vmem:[#allocation4 + $0x8] sm:$0xff]   ;;  %v956_v15 = vld [vmem:[#allocation7 + $0x48] sm:$0xff]  ;;  %s751_s21 = sshll.u32 %s1218_s6, 4  ;;  %s752_s21 = int_to_ptr.hbm [resolvable:$true] %s751_s21 }
  0x17   :  { %101 = vst.msk [vmem:[#allocation2 + $0x23] sm:$0x1] %vm92_vm0, %v1137_v0  ;;  %v95_v9 = vunpack.c.l.bf16 %v88_v7  ;;  %v96_v10 = vunpack.c.h.bf16 %v88_v7  ;;  %v102_v11 = vunpack.c.l.bf16 %v90_v8  ;;  %v103_v14 = vunpack.c.h.bf16 %v90_v8  ;;  %v951_v16 = vld [vmem:[#allocation7 + $0x20] sm:$0xff]  ;;  %v982_v30 = vld [vmem:[#allocation9 + $0xb8] sm:$0xff]  ;;  %v981_v32 = vld [vmem:[#allocation9 + $0xb0] sm:$0xff]  ;;  %s1139_s22 = smov 128  }
  0x18   :  { %343 = vst [vmem:[#allocation3] sm:$0x1] %v1137_v0  ;;  %177 = vmatpush.bf16.msra.mxu0 %v953_v4  ;;  %988 = vmatpush.bf16.msra.mxu3 %v953_v4  ;;  %v947_v17 = vld [vmem:[#allocation7] sm:$0xff]  ;;  %v986_v31 = vld [vmem:[#allocation10 + $0x18] sm:$0xff]  ;;  %v973_v47 = vld [vmem:[#allocation9 + $0x70] sm:$0xff]  ;;  %s1140_s23 = smov 8  }
  0x19   :  { %344 = vst [vmem:[#allocation3 + $0x11] sm:$0x1] %v1137_v0  ;;  %233 = vmatpush.bf16.msra.mxu1 %v949_v5  ;;  %v955_v18 = vld [vmem:[#allocation7 + $0x40] sm:$0xff]  ;;  %v974_v46 = vld [vmem:[#allocation9 + $0x78] sm:$0xff]  ;;  %v972_v49 = vld [vmem:[#allocation9 + $0x68] sm:$0xff] }
  0x1a   :  { %347 = vst [vmem:[#allocation3 + $0x12] sm:$0x1] %v1137_v0  ;;  %306 = vmatpush.bf16.msra.mxu2 %v957_v6  ;;  %v966_v48 = vld [vmem:[#allocation9 + $0x38] sm:$0xff]  ;;  %v980_v50 = vld [vmem:[#allocation9 + $0xa8] sm:$0xff]  ;;  %v965_v51 = vld [vmem:[#allocation9 + $0x30] sm:$0xff] }
  0x1b   :  { %348 = vst [vmem:[#allocation3 + $0x23] sm:$0x1] %v1137_v0  ;;  %v985_v52 = vld [vmem:[#allocation10 + $0x10] sm:$0xff]  ;;  %v971_v53 = vld [vmem:[#allocation9 + $0x60] sm:$0xff]  ;;  %v964_v54 = vld [vmem:[#allocation9 + $0x28] sm:$0xff] }
  0x1c   :  { %98 = vst.msk [vmem:[#allocation2 + $0x1] sm:$0xff] %vm97_vm1, %v95_v9  ;;  %178 = vmatpush.bf16.msra.mxu0 %v952_v12  ;;  %989 = vmatpush.bf16.msra.mxu3 %v952_v12  ;;  %v970_v55 = vld [vmem:[#allocation9 + $0x58] sm:$0xff]  ;;  %v979_v56 = vld [vmem:[#allocation9 + $0xa0] sm:$0xff]  ;;  %v969_v58 = vld [vmem:[#allocation9 + $0x50] sm:$0xff] }
  0x1d   :  { %99 = vst.msk [vmem:[#allocation2 + $0x9] sm:$0xff] %vm97_vm1, %v96_v10  ;;  %234 = vmatpush.bf16.msra.mxu1 %v948_v13  ;;  %v963_v57 = vld [vmem:[#allocation9 + $0x20] sm:$0xff]  ;;  %v978_v59 = vld [vmem:[#allocation9 + $0x98] sm:$0xff]  ;;  %v968_v61 = vld [vmem:[#allocation9 + $0x48] sm:$0xff] }
  0x1e   :  { %104 = vst.msk [vmem:[#allocation2 + $0x13] sm:$0xff] %vm97_vm1, %v102_v11  ;;  %307 = vmatpush.bf16.msra.mxu2 %v956_v15  ;;  %v962_v60 = vld [vmem:[#allocation9 + $0x18] sm:$0xff]  ;;  %v961_v62 = vld [vmem:[#allocation9 + $0x10] sm:$0xff]  ;;  %v967_v0 = vld [vmem:[#allocation9 + $0x40] sm:$0xff] }
  0x1f   :  { %105 = vst.msk [vmem:[#allocation2 + $0x1b] sm:$0xff] %vm97_vm1, %v103_v14  ;;  %v977_v63 = vld [vmem:[#allocation9 + $0x90] sm:$0xff]  ;;  %v984_v1 = vld [vmem:[#allocation10 + $0x8] sm:$0xff]  ;;  %v983_v4 = vld [vmem:[#allocation10] sm:$0xff] }
  0x20   :  { %179 = vmatpush.bf16.msra.mxu0 %v951_v16  ;;  %990 = vmatpush.bf16.msra.mxu3 %v951_v16  ;;  %v960_v2 = vld [vmem:[#allocation9 + $0x8] sm:$0xff]  ;;  %v959_v5 = vld [vmem:[#allocation9] sm:$0xff]  ;;  %v945_v7 = vld [vmem:[#allocation4] sm:$0xff] }
  0x21   :  { %235 = vmatpush.bf16.msra.mxu1 %v947_v17  ;;  %v976_v3 = vld [vmem:[#allocation9 + $0x88] sm:$0xff]  ;;  %v975_v6 = vld [vmem:[#allocation9 + $0x80] sm:$0xff] }
  0x22   :  { %308 = vmatpush.bf16.msra.mxu2 %v955_v18  ;;  %v1001_v11 = vld [vmem:[%s1214_s2] ss:$0 sm:$0xff] }
  0x23   :  { %v122_v19 = vld [vmem:[#allocation2 + $0x1] sm:$0xff] }
  0x24   :  { %v106_v20 = vld [vmem:[#allocation2] sm:$0xff]  ;;  %v123_v21 = vld [vmem:[#allocation2 + $0x9] sm:$0xff]  ;;  %449 = vmatpush.bf16.msrb.mxu3 %v974_v46  ;;  %520 = vmatpush.bf16.msrb.mxu0 %v966_v48 }
  0x25   :  { %v107_v22 = vld [vmem:[#allocation2 + $0x8] sm:$0xff]  ;;  %v127_v24 = vpack.c.bf16 %v123_v21, %v122_v19  ;;  %616 = vmatpush.bf16.msrb.mxu1 %v982_v30  ;;  %v124_v33 = vld [vmem:[#allocation2 + $0x11] sm:$0xff] }
  0x26   :  { %v251_v23 = vld [vmem:[#allocation2 + $0x2] sm:$0xff]  ;;  %v111_v25 = vpack.c.bf16 %v107_v22, %v106_v20  ;;  %v252_v26 = vld [vmem:[#allocation2 + $0xa] sm:$0xff]  ;;  %696 = vmatpush.bf16.msrb.mxu2 %v986_v31  ;;  %v125_v34 = vld [vmem:[#allocation2 + $0x19] sm:$0xff] }
  0x27   :  { %v256_v27 = vpack.c.bf16 %v252_v26, %v251_v23  ;;  %782 = vmatmul.msk.bf16.vlgmr.msra.gmra.mxu0 %vm97_vm1, %v127_v24  ;;  %v126_v28 = vld [vmem:[#allocation2 + $0x21] sm:$0x3]  ;;  %v108_v35 = vld [vmem:[#allocation2 + $0x10] sm:$0xff]  ;;  %v109_v36 = vld [vmem:[#allocation2 + $0x18] sm:$0xff]  ;;  %v128_v39 = vpack.c.bf16 %v125_v34, %v124_v33 }
  0x28   :  { %801 = vmatmul.msk.bf16.vlgmr.msra.gmra.mxu1 %vm97_vm1, %v111_v25  ;;  %v129_v29 = vpack.c.bf16 %v126_v28, %v126_v28  ;;  %v253_v37 = vld [vmem:[#allocation2 + $0x12] sm:$0xff]  ;;  %v254_v38 = vld [vmem:[#allocation2 + $0x1a] sm:$0xff]  ;;  %v112_v40 = vpack.c.bf16 %v109_v36, %v108_v35  ;;  %v255_v43 = vld [vmem:[#allocation2 + $0x22] sm:$0x3]  ;;  %450 = vmatpush.bf16.msrb.mxu3 %v973_v47 }
  0x29   :  { %820 = vmatmul.msk.bf16.vlgmr.msra.gmra.mxu2 %vm97_vm1, %v256_v27  ;;  %617 = vmatpush.bf16.msrb.mxu1 %v981_v32  ;;  %v257_v41 = vpack.c.bf16 %v254_v38, %v253_v37  ;;  %v110_v42 = vld [vmem:[#allocation2 + $0x20] sm:$0x3]  ;;  %v258_v45 = vpack.c.bf16 %v255_v43, %v255_v43  ;;  %v946_v21 = vld [vmem:[#allocation4 + $0x8] sm:$0xff] }
  0x2a   :  { %784 = vmatmul.msk.bf16.vlgmr.msra.gmra.mxu3 %vm97_vm1, %v129_v29  ;;  %v113_v44 = vpack.c.bf16 %v110_v42, %v110_v42  ;;  %697 = vmatpush.bf16.msrb.mxu2 %v985_v52 }
  0x2b   :  { %521 = vmatpush.bf16.msrb.mxu0 %v965_v51 }
  0x2c   :  { %451 = vmatpush.bf16.msrb.mxu3 %v972_v49 }
  0x2d   :  { %618 = vmatpush.bf16.msrb.mxu1 %v980_v50 }
  0x2e   :  { %698 = vmatpush.bf16.msrb.mxu2 %v984_v1 }
  0x2f   :  { %522 = vmatpush.bf16.msrb.mxu0 %v964_v54 }
  0x30   :  { %452 = vmatpush.bf16.msrb.mxu3 %v971_v53 }
  0x31   :  { %619 = vmatpush.bf16.msrb.mxu1 %v979_v56 }
  0x32   :  { %699 = vmatpush.bf16.msrb.mxu2 %v983_v4 }
  0x33   :  { %523 = vmatpush.bf16.msrb.mxu0 %v963_v57 }
  0x34   :  { %453 = vmatpush.bf16.msrb.mxu3 %v970_v55 }
  0x35   :  { %620 = vmatpush.bf16.msrb.mxu1 %v978_v59 }
  0x37   :  { %783 = vmatmul.msk.bf16.gmra.mxu0 %vm97_vm1, %v128_v39 }
  0x38   :  { %802 = vmatmul.msk.bf16.gmra.mxu1 %vm97_vm1, %v112_v40  ;;  %454 = vmatpush.bf16.msrb.mxu3 %v969_v58 }
  0x39   :  { %821 = vmatmul.msk.bf16.gmra.mxu2 %vm97_vm1, %v257_v41  ;;  %524 = vmatpush.bf16.msrb.mxu0 %v962_v60 }
  0x3a   :  { %621 = vmatpush.bf16.msrb.mxu1 %v977_v63 }
  0x3c   :  { %455 = vmatpush.bf16.msrb.mxu3 %v968_v61 }
  0x3d   :  { %525 = vmatpush.bf16.msrb.mxu0 %v961_v62 }
  0x3e   :  { %622 = vmatpush.bf16.msrb.mxu1 %v976_v3 }
  0x40   :  { %456 = vmatpush.bf16.msrb.mxu3 %v967_v0 }
  0x41   :  { %526 = vmatpush.bf16.msrb.mxu0 %v960_v2 }
  0x42   :  { %623 = vmatpush.bf16.msrb.mxu1 %v975_v6 }
  0x45   :  { %527 = vmatpush.bf16.msrb.mxu0 %v959_v5 }
  0x48   :  { %803 = vmatmul.msk.bf16.gmra.mxu1 %vm97_vm1, %v113_v44 }
  0x49   :  { %822 = vmatmul.msk.bf16.gmra.mxu2 %vm97_vm1, %v258_v45 }
  0x59   :  { %943 = vmatmul.msk.bf16.vlgmr.msrb.gmra.mxu2 %vm97_vm1, %v945_v7 }
  0x69   :  { %944 = vmatmul.msk.bf16.gmra.mxu2 %vm97_vm1, %v946_v21 }
  0xa4   :  { %v181_v8 = vpop.f32.mrf.mxu0 }
  0xa5   :  { %v237_v9 = vpop.f32.mrf.mxu1 }
  0xa6   :  { %v238_v10 = vadd.f32 %v237_v9, %v181_v8 }
  0xac   :  { %v310_v12 = vpop.f32.mrf.mxu2  ;;  %v183_v14 = vpop.f32.mrf.mxu0 }
  0xad   :  { %v324_v13 = vadd.f32 %v310_v12, %v238_v10  ;;  %v239_v15 = vpop.f32.mrf.mxu1  ;;  %v191_v16 = vpop.f32.mrf.mxu3 }
  0xae   :  { %v240_v19 = vadd.f32 %v239_v15, %v183_v14 }
  0xaf   :  { %v333_v17 = vadd.f32 %v1001_v11, %v324_v13 }
  0xb1   :  { %v338_v18 = vmax.f32 %v333_v17, 0.0 }
  0xb3   :  { %345 = vst [vmem:[#allocation3 + $0x1] sm:$0xff] %v338_v18 }
  0xb4   :  { %v312_v20 = vpop.f32.mrf.mxu2  ;;  %v186_v24 = vpop.f32.mrf.mxu0 }
  0xb5   :  { %v325_v22 = vadd.f32 %v312_v20, %v240_v19  ;;  %v242_v23 = vpop.f32.mrf.mxu1  ;;  %v193_v25 = vpop.f32.mrf.mxu3 }
  0xb6   :  { %v243_v28 = vadd.f32 %v242_v23, %v186_v24 }
  0xb7   :  { %v334_v26 = vadd.f32 %v1001_v11, %v325_v22 }
  0xb9   :  { %v339_v27 = vmax.f32 %v334_v26, 0.0 }
  0xba   :  { %v352_v36 = vld [vmem:[#allocation3] sm:$0xff] }
  0xbb   :  { %346 = vst [vmem:[#allocation3 + $0x9] sm:$0xff] %v339_v27  ;;  %v381_v29 = vpack.c.bf16 %v339_v27, %v338_v18 }
  0xbc   :  { %v315_v30 = vpop.f32.mrf.mxu2  ;;  %v188_v34 = vpop.f32.mrf.mxu0 }
  0xbd   :  { %v326_v31 = vadd.f32 %v315_v30, %v243_v28  ;;  %v244_v32 = vpop.f32.mrf.mxu1  ;;  %457 = vmatmul.bf16.vlgmr.msrb.gmra.mxu3 %v381_v29 }
  0xbe   :  { %v245_v40 = vadd.f32 %v244_v32, %v188_v34 }
  0xbf   :  { %v335_v33 = vadd.f32 %v1001_v11, %v326_v31 }
  0xc1   :  { %v340_v35 = vmax.f32 %v335_v33, 0.0 }
  0xc2   :  { %v353_v37 = vld [vmem:[#allocation3 + $0x8] sm:$0xff] }
  0xc3   :  { %v543_v38 = vld [vmem:[#allocation3 + $0x2] sm:$0xff]  ;;  %v544_v39 = vld [vmem:[#allocation3 + $0xa] sm:$0xff]  ;;  %349 = vst [vmem:[#allocation3 + $0x11] sm:$0xfc] %v340_v35  ;;  %v357_v41 = vpack.c.bf16 %v353_v37, %v352_v36 }
  0xc4   :  { %v548_v42 = vpack.c.bf16 %v544_v39, %v543_v38  ;;  %v317_v43 = vpop.f32.mrf.mxu2 }
  0xc5   :  { %v327_v44 = vadd.f32 %v317_v43, %v245_v40  ;;  %528 = vmatmul.bf16.vlgmr.msrb.gmra.mxu0 %v357_v41  ;;  %v247_v45 = vpop.f32.mrf.mxu1 }
  0xc6   :  { %624 = vmatmul.bf16.vlgmr.msrb.gmra.mxu1 %v548_v42  ;;  %v248_v48 = vadd.f32 %v247_v45, %v191_v16 }
  0xc7   :  { %v336_v46 = vadd.f32 %v1001_v11, %v327_v44 }
  0xc9   :  { %v341_v47 = vmax.f32 %v336_v46, 0.0 }
  0xca   :  { %v378_v49 = vld [vmem:[#allocation3 + $0x11] sm:$0xff] }
  0xcb   :  { %350 = vst [vmem:[#allocation3 + $0x19] sm:$0xff] %v341_v47  ;;  %v382_v50 = vpack.c.bf16 %v341_v47, %v378_v49  ;;  %v354_v56 = vld [vmem:[#allocation3 + $0x10] sm:$0xff] }
  0xcc   :  { %v320_v51 = vpop.f32.mrf.mxu2 }
  0xcd   :  { %v328_v52 = vadd.f32 %v320_v51, %v248_v48  ;;  %v249_v53 = vpop.f32.mrf.mxu1  ;;  %462 = vmatmul.bf16.gmra.mxu3 %v382_v50 }
  0xcf   :  { %v337_v54 = vadd.f32 %v1001_v11, %v328_v52  ;;  %v1002_v11 = vld [vmem:[%s1217_s5] ss:$0 sm:$0xff]  ;;  %s1138_s5 = smov [#allocation12]  }
  0xd0   :  { %s749_s18 = sshll.u32 %s1138_s5, 4  ;;  %s750_s18 = int_to_ptr.vmem [resolvable:$true] %s749_s18 }
  0xd1   :  { %v342_v55 = vmax.f32 %v337_v54, 0.0 }
  0xd2   :  { %v355_v57 = vld [vmem:[#allocation3 + $0x18] sm:$0xff] }
  0xd3   :  { %351 = vst [vmem:[#allocation3 + $0x21] sm:$0x3] %v342_v55  ;;  %v358_v58 = vpack.c.bf16 %v355_v57, %v354_v56  ;;  %v545_v60 = vld [vmem:[#allocation3 + $0x12] sm:$0xff] }
  0xd4   :  { %v322_v59 = vpop.f32.mrf.mxu2 }
  0xd5   :  { %533 = vmatmul.bf16.gmra.mxu0 %v358_v58 }
  0xda   :  { %v546_v61 = vld [vmem:[#allocation3 + $0x1a] sm:$0xff]  ;;  %v547_v3 = vld [vmem:[#allocation3 + $0x22] sm:$0x3] }
  0xdb   :  { %v380_v62 = vld [vmem:[#allocation3 + $0x21] sm:$0x3]  ;;  %v549_v63 = vpack.c.bf16 %v546_v61, %v545_v60  ;;  %v550_v4 = vpack.c.bf16 %v547_v3, %v547_v3 }
  0xdc   :  { %v383_v0 = vpack.c.bf16 %v380_v62, %v380_v62  ;;  %v356_v1 = vld [vmem:[#allocation3 + $0x20] sm:$0x3]  ;;  %v701_v5 = vpop.f32.mrf.mxu2 }
  0xdd   :  { %629 = vmatmul.bf16.gmra.mxu1 %v549_v63  ;;  %v359_v2 = vpack.c.bf16 %v356_v1, %v356_v1 }
  0xde   :  { %467 = vmatmul.bf16.gmra.mxu3 %v383_v0 }
  0xe4   :  { %v703_v15 = vpop.f32.mrf.mxu2 }
  0xe5   :  { %538 = vmatmul.bf16.gmra.mxu0 %v359_v2 }
  0xec   :  { %v706_v24 = vpop.f32.mrf.mxu2 }
  0xed   :  { %634 = vmatmul.bf16.gmra.mxu1 %v550_v4  ;;  %v726_v29 = vrot.slane %v706_v24, 6 }
  0xf4   :  { %v708_v33 = vpop.f32.mrf.mxu2 }
  0xf5   :  { %v727_v35 = vrot.slane %v708_v33, 6 }
  0xf7   :  { %v728_v42 = vsel %vm725_vm2, %v726_v29, %v727_v35 }
 0x140   :  { %v458_v6 = vpop.f32.mrf.mxu3 }
 0x142   :  { %v529_v7 = vpop.f32.mrf.mxu0 }
 0x143   :  { %v625_v8 = vpop.f32.mrf.mxu1  ;;  %v530_v9 = vadd.f32 %v529_v7, %v458_v6 }
 0x145   :  { %v639_v10 = vadd.f32 %v625_v8, %v530_v9 }
 0x147   :  { %v712_v12 = vadd.f32 %v701_v5, %v639_v10 }
 0x148   :  { %v460_v13 = vpop.f32.mrf.mxu3 }
 0x149   :  { %v717_v14 = vadd.f32 %v1002_v11, %v712_v12 }
 0x14a   :  { %v531_v16 = vpop.f32.mrf.mxu0 }
 0x14b   :  { %v719_v17 = vmax.f32 %v717_v14, 0.0  ;;  %v532_v18 = vadd.f32 %v531_v16, %v460_v13  ;;  %v627_v19 = vpop.f32.mrf.mxu1 }
 0x14d   :  { %721 = vst [vmem:[#allocation12] sm:$0xff] %v719_v17  ;;  %v640_v20 = vadd.f32 %v627_v19, %v532_v18 }
 0x14f   :  { %v713_v21 = vadd.f32 %v703_v15, %v640_v20 }
 0x150   :  { %v463_v22 = vpop.f32.mrf.mxu3 }
 0x151   :  { %v718_v23 = vadd.f32 %v1002_v11, %v713_v21 }
 0x152   :  { %v534_v25 = vpop.f32.mrf.mxu0 }
 0x153   :  { %v720_v26 = vmax.f32 %v718_v23, 0.0  ;;  %v535_v28 = vadd.f32 %v534_v25, %v463_v22 }
 0x155   :  { %722 = vst [vmem:[#allocation12 + $0x8] sm:$0xff] %v720_v26 }
 0x158   :  { %v465_v27 = vpop.f32.mrf.mxu3 }
 0x15a   :  { %v536_v30 = vpop.f32.mrf.mxu0  ;;  %v630_v31 = vpop.f32.mrf.mxu1 }
 0x15b   :  { %v641_v32 = vadd.f32 %v630_v31, %v535_v28  ;;  %v537_v39 = vadd.f32 %v536_v30, %v465_v27 }
 0x15d   :  { %v732_v34 = vadd.f32 %v726_v29, %v641_v32 }
 0x15f   :  { %v735_v36 = vadd.f32 %v1002_v11, %v732_v34 }
 0x161   :  { %v468_v37 = vpop.f32.mrf.mxu3  ;;  %v738_v38 = vmax.f32 %v735_v36, 0.0 }
 0x162   :  { %v539_v40 = vpop.f32.mrf.mxu0  ;;  %v632_v41 = vpop.f32.mrf.mxu1 }
 0x163   :  { %742 = vst [vmem:[#allocation12 + $0xe] sm:$0xfc] %v738_v38  ;;  %v642_v43 = vadd.f32 %v632_v41, %v537_v39  ;;  %v540_v48 = vadd.f32 %v539_v40, %v468_v37 }
 0x165   :  { %v733_v44 = vadd.f32 %v728_v42, %v642_v43 }
 0x167   :  { %v736_v45 = vadd.f32 %v1002_v11, %v733_v44 }
 0x169   :  { %v470_v46 = vpop.f32.mrf.mxu3  ;;  %v739_v47 = vmax.f32 %v736_v45, 0.0 }
 0x16a   :  { %v541_v49 = vpop.f32.mrf.mxu0  ;;  %v635_v50 = vpop.f32.mrf.mxu1 }
 0x16b   :  { %743 = vst [vmem:[#allocation12 + $0x16] sm:$0xff] %v739_v47  ;;  %v643_v51 = vadd.f32 %v635_v50, %v540_v48 }
 0x16d   :  { %v734_v52 = vadd.f32 %v727_v35, %v643_v51 }
 0x16f   :  { %v737_v53 = vadd.f32 %v1002_v11, %v734_v52 }
 0x171   :  { %v740_v54 = vmax.f32 %v737_v53, 0.0 }
 0x172   :  { %v637_v55 = vpop.f32.mrf.mxu1 }
 0x173   :  { %744 = vst [vmem:[#allocation12 + $0x1e] sm:$0x3] %v740_v54 }
 0x174   :  { %757 = dma.vmem_to_hbm [thread:$0]  %s750_s18, 512, %s752_s21, [#allocation6], %s1139_s22, %s1139_s22, %s1140_s23  }
 0x175   :  { %1129 = dma.done.wait [#allocation6], 512  }
 0x176   :  { %1130 = vsyncadd [#allocation6], 4294966784 }
 0x177   :  { %762 = vsyncpa [#allocation5], 1 }
 0x178   :  { %763 = vsyncpa [#allocation8], 1 }
 0x179   :  { %764 = vsyncpa [#allocation11], 1 }
 0x17a   :  { %765 = vsyncpa [#allocation6], 1 }

</bundles_post_ra>
